<compile_context>
chip_gen: v7x
topology: tpu7x:2x2x1
jax: 0.10.0
libtpu: 0.0.40
codegen_flags: <defaults>
</compile_context>

<pallas_src>
import functools
import math

import jax
import jax.numpy as jnp
from jax.experimental import pallas as pl
from jax.experimental.pallas import tpu as pltpu


_VMEM_LIMIT = 48 * 1024 * 1024  # leaves headroom inside v7x's 64 MiB physical VMEM


def _cparams(n_axes=1):
    return pltpu.CompilerParams(
        dimension_semantics=("parallel",) * n_axes,
        vmem_limit_bytes=_VMEM_LIMIT,
    )


def _pick_row_tile(rows, cap=512):
    # Largest row tile (multiple of 8, <= cap) that divides `rows`; else whole extent.
    for tm in (512, 256, 128, 64, 32, 16, 8):
        if tm <= cap and rows % tm == 0:
            return tm
    return rows


def _pick_seq_tile(length, cap=256):
    for tq in (256, 128, 64, 32, 16, 8):
        if tq <= cap and length % tq == 0:
            return tq
    return length


# ----------------------------------------------------------------------------
# Kernel 1: fused attention block
#   (Q proj | KV proj | per-head attention | out proj | residual add | LayerNorm)
# One grid step = one (batch, q-row-block).  KV source is read in full per step.
# ----------------------------------------------------------------------------

def _fused_attn_kernel(xq_ref, xkv_ref, wq_ref, bq_ref, wkv_ref, bkv_ref,
                       wo_ref, bo_ref, g_ref, b_ref,
                       o_ref, p_ref, ctx_sc, *, n_heads, eps):
    xq = xq_ref[0]                                  # (tq, D) f32 — residual + query rows
    xkv = xkv_ref[0]                                # (S, D)  f32 — key/value source
    d_model = xq.shape[-1]
    dh = d_model // n_heads

    # Projections (scale 1/sqrt(dh) already folded into wq/bq).
    q = jnp.dot(xq.astype(jnp.bfloat16), wq_ref[...],
                preferred_element_type=jnp.float32) + bq_ref[...]          # (tq, D)
    kv = jnp.dot(xkv.astype(jnp.bfloat16), wkv_ref[...],
                 preferred_element_type=jnp.float32) + bkv_ref[...]        # (S, 2D)
    q = q.astype(jnp.bfloat16)
    k = kv[:, :d_model].astype(jnp.bfloat16)
    v = kv[:, d_model:].astype(jnp.bfloat16)

    # Per-head attention; context accumulated slice-by-slice into VMEM scratch.
    for h in range(n_heads):                        # static unroll (n_heads small & static)
        sl = slice(h * dh, (h + 1) * dh)
        s = jax.lax.dot_general(q[:, sl], k[:, sl], (((1,), (1,)), ((), ())),
                                preferred_element_type=jnp.float32)        # (tq, S)
        s = s - jnp.max(s, axis=-1, keepdims=True)
        e = jnp.exp(s)
        p = e / jnp.sum(e, axis=-1, keepdims=True)  # exact: probs are a module output
        p_ref[0, h] = p.astype(p_ref.dtype)
        ctx_sc[:, sl] = jnp.dot(p.astype(jnp.bfloat16), v[:, sl],
                                preferred_element_type=jnp.float32)

    # Out-projection + residual + LayerNorm (f32 math), single lane-dense store.
    y = jnp.dot(ctx_sc[...].astype(jnp.bfloat16), wo_ref[...],
                preferred_element_type=jnp.float32) + bo_ref[...]
    h_res = xq + y
    mu = jnp.mean(h_res, axis=-1, keepdims=True)
    var = jnp.mean((h_res - mu) ** 2, axis=-1, keepdims=True)
    inv = jax.lax.rsqrt(var + eps)
    o_ref[0] = ((h_res - mu) * inv * g_ref[...] + b_ref[...]).astype(o_ref.dtype)


def fused_attention_block(xq, xkv, wq, bq, wkv, bkv, wo, bo, gamma, beta,
                          n_heads, eps=1e-5):
    B, L, D = xq.shape
    _, S, _ = xkv.shape
    tq = _pick_seq_tile(L)
    grid = (B, L // tq)
    return pl.pallas_call(
        functools.partial(_fused_attn_kernel, n_heads=n_heads, eps=eps),
        out_shape=(
            jax.ShapeDtypeStruct((B, L, D), jnp.float32),            # normalized residual stream
            jax.ShapeDtypeStruct((B, n_heads, L, S), jnp.float32),   # attention probabilities
        ),
        grid=grid,
        in_specs=[
            pl.BlockSpec((1, tq, D), lambda b, qi: (b, qi, 0)),      # query / residual rows
            pl.BlockSpec((1, S, D), lambda b, qi: (b, 0, 0)),        # kv source (full length)
            pl.BlockSpec((D, D), lambda b, qi: (0, 0)),              # Wq (scale folded), resident
            pl.BlockSpec((1, D), lambda b, qi: (0, 0)),
            pl.BlockSpec((D, 2 * D), lambda b, qi: (0, 0)),          # [Wk | Wv], resident
            pl.BlockSpec((1, 2 * D), lambda b, qi: (0, 0)),
            pl.BlockSpec((D, D), lambda b, qi: (0, 0)),              # Wo, resident
            pl.BlockSpec((1, D), lambda b, qi: (0, 0)),
            pl.BlockSpec((1, D), lambda b, qi: (0, 0)),              # LN gamma
            pl.BlockSpec((1, D), lambda b, qi: (0, 0)),              # LN beta
        ],
        out_specs=(
            pl.BlockSpec((1, tq, D), lambda b, qi: (b, qi, 0)),
            pl.BlockSpec((1, n_heads, tq, S), lambda b, qi: (b, 0, qi, 0)),
        ),
        scratch_shapes=[pltpu.VMEM((tq, D), jnp.float32)],           # context accumulator
        compiler_params=_cparams(len(grid)),
    )(xq, xkv, wq, bq, wkv, bkv, wo, bo, gamma, beta)


# ----------------------------------------------------------------------------
# Kernel 2: fused FFN (1x1 conv -> relu -> 1x1 conv) + residual-add + LayerNorm
# ----------------------------------------------------------------------------

def _ffn_add_ln_kernel(x_ref, w1_ref, b1_ref, w2_ref, b2_ref, g_ref, b_ref, o_ref, *, eps):
    x = x_ref[...]                                         # (tm, D) f32, also the residual
    h = jnp.dot(x.astype(jnp.bfloat16), w1_ref[...],
                preferred_element_type=jnp.float32) + b1_ref[...]
    h = jnp.maximum(h, 0.0)
    y = jnp.dot(h.astype(jnp.bfloat16), w2_ref[...],
                preferred_element_type=jnp.float32) + b2_ref[...]
    r = x + y
    mu = jnp.mean(r, axis=-1, keepdims=True)
    var = jnp.mean((r - mu) ** 2, axis=-1, keepdims=True)
    inv = jax.lax.rsqrt(var + eps)
    o_ref[...] = ((r - mu) * inv * g_ref[...] + b_ref[...]).astype(o_ref.dtype)


def ffn_add_layernorm(x2d, w1, b1, w2, b2, gamma, beta, eps=1e-5):
    rows, D = x2d.shape
    d_ff = w1.shape[1]
    tm = _pick_row_tile(rows)
    return pl.pallas_call(
        functools.partial(_ffn_add_ln_kernel, eps=eps),
        out_shape=jax.ShapeDtypeStruct((rows, D), jnp.float32),
        grid=(rows // tm,),
        in_specs=[
            pl.BlockSpec((tm, D), lambda i: (i, 0)),
            pl.BlockSpec((D, d_ff), lambda i: (0, 0)),
            pl.BlockSpec((1, d_ff), lambda i: (0, 0)),
            pl.BlockSpec((d_ff, D), lambda i: (0, 0)),
            pl.BlockSpec((1, D), lambda i: (0, 0)),
            pl.BlockSpec((1, D), lambda i: (0, 0)),
            pl.BlockSpec((1, D), lambda i: (0, 0)),
        ],
        out_specs=pl.BlockSpec((tm, D), lambda i: (i, 0)),
        compiler_params=_cparams(1),
    )(x2d, w1, b1, w2, b2, gamma, beta)


# ----------------------------------------------------------------------------
# DecoderLayer forward
# ----------------------------------------------------------------------------

def decoder_layer(x, cross, prep, n_heads):
    B, L, D = x.shape

    # --- self-attention + residual + norm1 (dropout == identity in eval mode) ---
    x1, attn = fused_attention_block(
        x, x, prep["self_wq"], prep["self_bq"], prep["self_wkv"], prep["self_bkv"],
        prep["self_wo"], prep["self_bo"], prep["ln1_g"], prep["ln1_b"], n_heads)

    # --- cross-attention + residual + norm2 ---
    x2, cross_attn = fused_attention_block(
        x1, cross, prep["cross_wq"], prep["cross_bq"], prep["cross_wkv"], prep["cross_bkv"],
        prep["cross_wo"], prep["cross_bo"], prep["ln2_g"], prep["ln2_b"], n_heads)

    # --- FFN (1x1 convs) + residual + norm3 ---
    out = ffn_add_layernorm(x2.reshape(B * L, D), prep["w1"], prep["b1"],
                            prep["w2"], prep["b2"], prep["ln3_g"], prep["ln3_b"])
    return out.reshape(B, L, D), attn, cross_attn


# ----------------------------------------------------------------------------
# Parameter construction / preparation (fuse + scale-fold + bf16-cast weights once)
# ----------------------------------------------------------------------------

def make_attn_params(key, d_model):
    ks = jax.random.split(key, 8)
    s = 1.0 / math.sqrt(d_model)
    return {
        "wq": jax.random.normal(ks[0], (d_model, d_model), jnp.float32) * s,
        "bq": jax.random.normal(ks[1], (1, d_model), jnp.float32) * 0.01,
        "wk": jax.random.normal(ks[2], (d_model, d_model), jnp.float32) * s,
        "bk": jax.random.normal(ks[3], (1, d_model), jnp.float32) * 0.01,
        "wv": jax.random.normal(ks[4], (d_model, d_model), jnp.float32) * s,
        "bv": jax.random.normal(ks[5], (1, d_model), jnp.float32) * 0.01,
        "wo": jax.random.normal(ks[6], (d_model, d_model), jnp.float32) * s,
        "bo": jax.random.normal(ks[7], (1, d_model), jnp.float32) * 0.01,
    }


def make_params(key, d_model, d_ff):
    k_self, k_cross, k1, k2, k3, k4 = jax.random.split(key, 6)
    return {
        "self_attn": make_attn_params(k_self, d_model),
        "cross_attn": make_attn_params(k_cross, d_model),
        "w1": jax.random.normal(k1, (d_model, d_ff), jnp.float32) / math.sqrt(d_model),
        "b1": jax.random.normal(k2, (1, d_ff), jnp.float32) * 0.01,
        "w2": jax.random.normal(k3, (d_ff, d_model), jnp.float32) / math.sqrt(d_ff),
        "b2": jax.random.normal(k4, (1, d_model), jnp.float32) * 0.01,
        "ln1_g": jnp.ones((1, d_model), jnp.float32),
        "ln1_b": jnp.zeros((1, d_model), jnp.float32),
        "ln2_g": jnp.ones((1, d_model), jnp.float32),
        "ln2_b": jnp.zeros((1, d_model), jnp.float32),
        "ln3_g": jnp.ones((1, d_model), jnp.float32),
        "ln3_b": jnp.zeros((1, d_model), jnp.float32),
    }


def prepare_params(params, n_heads):
    """One-time prep: concat K|V weights, fold 1/sqrt(Dh) into Q, cast weights to bf16."""
    D = params["self_attn"]["wq"].shape[0]
    scale = 1.0 / math.sqrt(D // n_heads)
    sa, ca = params["self_attn"], params["cross_attn"]
    bf = lambda a: a.astype(jnp.bfloat16)
    return {
        "self_wq": bf(sa["wq"] * scale), "self_bq": sa["bq"] * scale,
        "self_wkv": bf(jnp.concatenate([sa["wk"], sa["wv"]], axis=1)),
        "self_bkv": jnp.concatenate([sa["bk"], sa["bv"]], axis=1),
        "self_wo": bf(sa["wo"]), "self_bo": sa["bo"],
        "cross_wq": bf(ca["wq"] * scale), "cross_bq": ca["bq"] * scale,
        "cross_wkv": bf(jnp.concatenate([ca["wk"], ca["wv"]], axis=1)),
        "cross_bkv": jnp.concatenate([ca["bk"], ca["bv"]], axis=1),
        "cross_wo": bf(ca["wo"]), "cross_bo": ca["bo"],
        "w1": bf(params["w1"]), "b1": params["b1"],
        "w2": bf(params["w2"]), "b2": params["b2"],
        "ln1_g": params["ln1_g"], "ln1_b": params["ln1_b"],
        "ln2_g": params["ln2_g"], "ln2_b": params["ln2_b"],
        "ln3_g": params["ln3_g"], "ln3_b": params["ln3_b"],
    }


# ----------------------------------------------------------------------------
# Pure-JAX f32 reference (module semantics)
# ----------------------------------------------------------------------------

def ref_attention(x_q, x_kv, p, n_heads):
    B, L, D = x_q.shape
    _, S, _ = x_kv.shape
    Dh = D // n_heads
    q = (x_q @ p["wq"] + p["bq"]).reshape(B, L, n_heads, Dh)
    k = (x_kv @ p["wk"] + p["bk"]).reshape(B, S, n_heads, Dh)
    v = (x_kv @ p["wv"] + p["bv"]).reshape(B, S, n_heads, Dh)
    s = jnp.einsum("blhe,bshe->bhls", q, k) / math.sqrt(Dh)
    pr = jax.nn.softmax(s, axis=-1)
    o = jnp.einsum("bhls,bshd->blhd", pr, v).reshape(B, L, D)
    return o @ p["wo"] + p["bo"], pr


def ref_ln(h, g, b, eps=1e-5):
    mu = jnp.mean(h, axis=-1, keepdims=True)
    var = jnp.mean((h - mu) ** 2, axis=-1, keepdims=True)
    return (h - mu) * jax.lax.rsqrt(var + eps) * g + b


def ref_decoder_layer(x, cross, p, n_heads):
    nx, attn = ref_attention(x, x, p["self_attn"], n_heads)
    x = ref_ln(x + nx, p["ln1_g"], p["ln1_b"])
    nx, cattn = ref_attention(x, cross, p["cross_attn"], n_heads)
    x = ref_ln(x + nx, p["ln2_g"], p["ln2_b"])
    y = jnp.maximum(x @ p["w1"] + p["b1"], 0.0) @ p["w2"] + p["b2"]
    return ref_ln(x + y, p["ln3_g"], p["ln3_b"]), attn, cattn


if __name__ == "__main__":
    B, L, S = 2, 8, 16          # batch, decoder length, encoder (cross) length
    d_model, n_heads = 32, 4
    d_ff = 4 * d_model

    key = jax.random.PRNGKey(0)
    kx, kc, kp = jax.random.split(key, 3)
    x = jax.random.normal(kx, (B, L, d_model), jnp.float32)
    cross = jax.random.normal(kc, (B, S, d_model), jnp.float32)
    params = make_params(kp, d_model, d_ff)
    prep = prepare_params(params, n_heads)

    fwd = jax.jit(decoder_layer, static_argnames=("n_heads",))
    out, attn, cross_attn = fwd(x, cross, prep, n_heads=n_heads)
    out, attn, cross_attn = jax.block_until_ready((out, attn, cross_attn))

    # correctness check against pure-JAX f32 reference (kernels use bf16 matmuls
    # with f32 accumulation, so tolerances are loosened accordingly)
    r_out, r_attn, r_cattn = ref_decoder_layer(x, cross, params, n_heads)
    assert out.shape == (B, L, d_model)
    assert attn.shape == (B, n_heads, L, L)
    assert cross_attn.shape == (B, n_heads, L, S)
    assert jnp.allclose(out, r_out, atol=5e-2, rtol=5e-2), float(jnp.max(jnp.abs(out - r_out)))
    assert jnp.allclose(attn, r_attn, atol=2e-2, rtol=2e-2)
    assert jnp.allclose(cross_attn, r_cattn, atol=2e-2, rtol=2e-2)

    print("KERNEL_OK")
</pallas_src>

<mosaic_0001>
module attributes {stable_mosaic.version = 11 : i64} {
  func.func @_ffn_add_ln_kernel(%arg0: i32, %arg1: memref<16x32xf32, #tpu.memory_space<vmem>>, %arg2: memref<32x128xbf16, #tpu.memory_space<vmem>>, %arg3: memref<1x128xf32, #tpu.memory_space<vmem>>, %arg4: memref<128x32xbf16, #tpu.memory_space<vmem>>, %arg5: memref<1x32xf32, #tpu.memory_space<vmem>>, %arg6: memref<1x32xf32, #tpu.memory_space<vmem>>, %arg7: memref<1x32xf32, #tpu.memory_space<vmem>>, %arg8: memref<16x32xf32, #tpu.memory_space<vmem>>) attributes {dimension_semantics = [#tpu.dimension_semantics<parallel>], iteration_bounds = array<i64: 1>, scalar_prefetch = 0 : i64, scratch_operands = 0 : i64, tpu.core_type = #tpu.core_type<tc>, window_params = [{transform_indices = @transform_0, window_bounds = array<i64: 16, 32>}, {pipeline_mode = #tpu.pipeline_mode<synchronous>, transform_indices = @transform_1, window_bounds = array<i64: 32, 128>}, {pipeline_mode = #tpu.pipeline_mode<synchronous>, transform_indices = @transform_2, window_bounds = array<i64: 1, 128>}, {pipeline_mode = #tpu.pipeline_mode<synchronous>, transform_indices = @transform_3, window_bounds = array<i64: 128, 32>}, {pipeline_mode = #tpu.pipeline_mode<synchronous>, transform_indices = @transform_4, window_bounds = array<i64: 1, 32>}, {pipeline_mode = #tpu.pipeline_mode<synchronous>, transform_indices = @transform_5, window_bounds = array<i64: 1, 32>}, {pipeline_mode = #tpu.pipeline_mode<synchronous>, transform_indices = @transform_6, window_bounds = array<i64: 1, 32>}, {transform_indices = @transform_7, window_bounds = array<i64: 16, 32>}]} {
    %c0 = arith.constant 0 : index
    %c0_0 = arith.constant 0 : index
    %0 = vector.load %arg1[%c0, %c0_0] : memref<16x32xf32, #tpu.memory_space<vmem>>, vector<16x32xf32>
    %1 = arith.truncf %0 : vector<16x32xf32> to vector<16x32xbf16>
    %c0_1 = arith.constant 0 : index
    %c0_2 = arith.constant 0 : index
    %2 = vector.load %arg2[%c0_1, %c0_2] : memref<32x128xbf16, #tpu.memory_space<vmem>>, vector<32x128xbf16>
    %cst = arith.constant dense<0.000000e+00> : vector<16x128xf32>
    %3 = tpu.matmul %1, %2, %cst {dimension_numbers = #tpu.dot_dimension_numbers<[1], [0], [0], [1], [0, 0, 1, 1], [], []>} : vector<16x32xbf16>, vector<32x128xbf16>, vector<16x128xf32> -> vector<16x128xf32>
    %c0_3 = arith.constant 0 : index
    %c0_4 = arith.constant 0 : index
    %4 = vector.load %arg3[%c0_3, %c0_4] : memref<1x128xf32, #tpu.memory_space<vmem>>, vector<1x128xf32>
    %5 = vector.broadcast %4 : vector<1x128xf32> to vector<16x128xf32>
    %6 = arith.addf %3, %5 : vector<16x128xf32>
    %cst_5 = arith.constant 0.000000e+00 : f32
    %7 = vector.broadcast %cst_5 : f32 to vector<16x128xf32>
    %8 = arith.maximumf %6, %7 : vector<16x128xf32>
    %9 = arith.truncf %8 : vector<16x128xf32> to vector<16x128xbf16>
    %c0_6 = arith.constant 0 : index
    %c0_7 = arith.constant 0 : index
    %10 = vector.load %arg4[%c0_6, %c0_7] : memref<128x32xbf16, #tpu.memory_space<vmem>>, vector<128x32xbf16>
    %cst_8 = arith.constant dense<0.000000e+00> : vector<16x32xf32>
    %11 = tpu.matmul %9, %10, %cst_8 {dimension_numbers = #tpu.dot_dimension_numbers<[1], [0], [0], [1], [0, 0, 1, 1], [], []>} : vector<16x128xbf16>, vector<128x32xbf16>, vector<16x32xf32> -> vector<16x32xf32>
    %c0_9 = arith.constant 0 : index
    %c0_10 = arith.constant 0 : index
    %12 = vector.load %arg5[%c0_9, %c0_10] : memref<1x32xf32, #tpu.memory_space<vmem>>, vector<1x32xf32>
    %13 = vector.broadcast %12 : vector<1x32xf32> to vector<16x32xf32>
    %14 = arith.addf %11, %13 : vector<16x32xf32>
    %15 = arith.addf %0, %14 : vector<16x32xf32>
    %cst_11 = arith.constant dense<0.000000e+00> : vector<16xf32>
    %16 = vector.multi_reduction <add>, %15, %cst_11 [1] : vector<16x32xf32> to vector<16xf32>
    %17 = vector.shape_cast %16 : vector<16xf32> to vector<16x1xf32>
    %cst_12 = arith.constant 3.200000e+01 : f32
    %18 = vector.broadcast %cst_12 : f32 to vector<16x1xf32>
    %19 = arith.divf %17, %18 : vector<16x1xf32>
    %20 = vector.broadcast %19 : vector<16x1xf32> to vector<16x32xf32>
    %21 = arith.subf %15, %20 : vector<16x32xf32>
    %22 = arith.mulf %21, %21 : vector<16x32xf32>
    %cst_13 = arith.constant dense<0.000000e+00> : vector<16xf32>
    %23 = vector.multi_reduction <add>, %22, %cst_13 [1] : vector<16x32xf32> to vector<16xf32>
    %24 = vector.shape_cast %23 : vector<16xf32> to vector<16x1xf32>
    %cst_14 = arith.constant 3.200000e+01 : f32
    %25 = vector.broadcast %cst_14 : f32 to vector<16x1xf32>
    %26 = arith.divf %24, %25 : vector<16x1xf32>
    %cst_15 = arith.constant 9.99999974E-6 : f32
    %27 = vector.broadcast %cst_15 : f32 to vector<16x1xf32>
    %28 = arith.addf %26, %27 : vector<16x1xf32>
    %29 = math.rsqrt %28 : vector<16x1xf32>
    %30 = vector.broadcast %19 : vector<16x1xf32> to vector<16x32xf32>
    %31 = arith.subf %15, %30 : vector<16x32xf32>
    %32 = vector.broadcast %29 : vector<16x1xf32> to vector<16x32xf32>
    %33 = arith.mulf %31, %32 : vector<16x32xf32>
    %c0_16 = arith.constant 0 : index
    %c0_17 = arith.constant 0 : index
    %34 = vector.load %arg6[%c0_16, %c0_17] : memref<1x32xf32, #tpu.memory_space<vmem>>, vector<1x32xf32>
    %35 = vector.broadcast %34 : vector<1x32xf32> to vector<16x32xf32>
    %36 = arith.mulf %33, %35 : vector<16x32xf32>
    %c0_18 = arith.constant 0 : index
    %c0_19 = arith.constant 0 : index
    %37 = vector.load %arg7[%c0_18, %c0_19] : memref<1x32xf32, #tpu.memory_space<vmem>>, vector<1x32xf32>
    %38 = vector.broadcast %37 : vector<1x32xf32> to vector<16x32xf32>
    %39 = arith.addf %36, %38 : vector<16x32xf32>
    %c0_20 = arith.constant 0 : index
    %c0_21 = arith.constant 0 : index
    %40 = vector.load %arg8[%c0_20, %c0_21] : memref<16x32xf32, #tpu.memory_space<vmem>>, vector<16x32xf32>
    tpu.vector_store %arg8[%c0_20, %c0_21], %39 {strides = array<i32>} : memref<16x32xf32, #tpu.memory_space<vmem>>, vector<16x32xf32>,
    return
  }
  func.func @transform_0(%arg0: i32) -> (i32, i32) {
    %c0_i32 = arith.constant 0 : i32
    %c0_i32_0 = arith.constant 0 : i32
    return %arg0, %c0_i32 : i32, i32
  }
  func.func @transform_1(%arg0: i32) -> (i32, i32) {
    %c0_i32 = arith.constant 0 : i32
    %c0_i32_0 = arith.constant 0 : i32
    %c0_i32_1 = arith.constant 0 : i32
    return %c0_i32, %c0_i32_0 : i32, i32
  }
  func.func @transform_2(%arg0: i32) -> (i32, i32) {
    %c0_i32 = arith.constant 0 : i32
    %c0_i32_0 = arith.constant 0 : i32
    %c0_i32_1 = arith.constant 0 : i32
    return %c0_i32, %c0_i32_0 : i32, i32
  }
  func.func @transform_3(%arg0: i32) -> (i32, i32) {
    %c0_i32 = arith.constant 0 : i32
    %c0_i32_0 = arith.constant 0 : i32
    %c0_i32_1 = arith.constant 0 : i32
    return %c0_i32, %c0_i32_0 : i32, i32
  }
  func.func @transform_4(%arg0: i32) -> (i32, i32) {
    %c0_i32 = arith.constant 0 : i32
    %c0_i32_0 = arith.constant 0 : i32
    %c0_i32_1 = arith.constant 0 : i32
    return %c0_i32, %c0_i32_0 : i32, i32
  }
  func.func @transform_5(%arg0: i32) -> (i32, i32) {
    %c0_i32 = arith.constant 0 : i32
    %c0_i32_0 = arith.constant 0 : i32
    %c0_i32_1 = arith.constant 0 : i32
    return %c0_i32, %c0_i32_0 : i32, i32
  }
  func.func @transform_6(%arg0: i32) -> (i32, i32) {
    %c0_i32 = arith.constant 0 : i32
    %c0_i32_0 = arith.constant 0 : i32
    %c0_i32_1 = arith.constant 0 : i32
    return %c0_i32, %c0_i32_0 : i32, i32
  }
  func.func @transform_7(%arg0: i32) -> (i32, i32) {
    %c0_i32 = arith.constant 0 : i32
    %c0_i32_0 = arith.constant 0 : i32
    return %arg0, %c0_i32 : i32, i32
  }
}

module attributes {stable_mosaic.version = 11 : i64} {
  func.func @_fused_attn_kernel(%arg0: i32, %arg1: i32, %arg2: memref<1x8x32xf32, #tpu.memory_space<vmem>>, %arg3: memref<1x8x32xf32, #tpu.memory_space<vmem>>, %arg4: memref<32x32xbf16, #tpu.memory_space<vmem>>, %arg5: memref<1x32xf32, #tpu.memory_space<vmem>>, %arg6: memref<32x64xbf16, #tpu.memory_space<vmem>>, %arg7: memref<1x64xf32, #tpu.memory_space<vmem>>, %arg8: memref<32x32xbf16, #tpu.memory_space<vmem>>, %arg9: memref<1x32xf32, #tpu.memory_space<vmem>>, %arg10: memref<1x32xf32, #tpu.memory_space<vmem>>, %arg11: memref<1x32xf32, #tpu.memory_space<vmem>>, %arg12: memref<1x8x32xf32, #tpu.memory_space<vmem>>, %arg13: memref<1x4x8x8xf32, #tpu.memory_space<vmem>>, %arg14: memref<8x32xf32, #tpu.memory_space<vmem>>) attributes {dimension_semantics = [#tpu.dimension_semantics<parallel>, #tpu.dimension_semantics<parallel>], iteration_bounds = array<i64: 2, 1>, scalar_prefetch = 0 : i64, scratch_operands = 1 : i64, tpu.core_type = #tpu.core_type<tc>, window_params = [{transform_indices = @transform_0, window_bounds = array<i64: 1, 8, 32>}, {transform_indices = @transform_1, window_bounds = array<i64: 1, 8, 32>}, {pipeline_mode = #tpu.pipeline_mode<synchronous>, transform_indices = @transform_2, window_bounds = array<i64: 32, 32>}, {pipeline_mode = #tpu.pipeline_mode<synchronous>, transform_indices = @transform_3, window_bounds = array<i64: 1, 32>}, {pipeline_mode = #tpu.pipeline_mode<synchronous>, transform_indices = @transform_4, window_bounds = array<i64: 32, 64>}, {pipeline_mode = #tpu.pipeline_mode<synchronous>, transform_indices = @transform_5, window_bounds = array<i64: 1, 64>}, {pipeline_mode = #tpu.pipeline_mode<synchronous>, transform_indices = @transform_6, window_bounds = array<i64: 32, 32>}, {pipeline_mode = #tpu.pipeline_mode<synchronous>, transform_indices = @transform_7, window_bounds = array<i64: 1, 32>}, {pipeline_mode = #tpu.pipeline_mode<synchronous>, transform_indices = @transform_8, window_bounds = array<i64: 1, 32>}, {pipeline_mode = #tpu.pipeline_mode<synchronous>, transform_indices = @transform_9, window_bounds = array<i64: 1, 32>}, {transform_indices = @transform_10, window_bounds = array<i64: 1, 8, 32>}, {transform_indices = @transform_11, window_bounds = array<i64: 1, 4, 8, 8>}]} {
    %c0 = arith.constant 0 : index
    %c0_0 = arith.constant 0 : index
    %c0_1 = arith.constant 0 : index
    %0 = vector.load %arg2[%c0, %c0_0, %c0_1] : memref<1x8x32xf32, #tpu.memory_space<vmem>>, vector<1x8x32xf32>
    %1 = vector.shape_cast %0 : vector<1x8x32xf32> to vector<8x32xf32>
    %c0_2 = arith.constant 0 : index
    %c0_3 = arith.constant 0 : index
    %c0_4 = arith.constant 0 : index
    %2 = vector.load %arg3[%c0_2, %c0_3, %c0_4] : memref<1x8x32xf32, #tpu.memory_space<vmem>>, vector<1x8x32xf32>
    %3 = vector.shape_cast %2 : vector<1x8x32xf32> to vector<8x32xf32>
    %4 = arith.truncf %1 : vector<8x32xf32> to vector<8x32xbf16>
    %c0_5 = arith.constant 0 : index
    %c0_6 = arith.constant 0 : index
    %5 = vector.load %arg4[%c0_5, %c0_6] : memref<32x32xbf16, #tpu.memory_space<vmem>>, vector<32x32xbf16>
    %cst = arith.constant dense<0.000000e+00> : vector<8x32xf32>
    %6 = tpu.matmul %4, %5, %cst {dimension_numbers = #tpu.dot_dimension_numbers<[1], [0], [0], [1], [0, 0, 1, 1], [], []>} : vector<8x32xbf16>, vector<32x32xbf16>, vector<8x32xf32> -> vector<8x32xf32>
    %c0_7 = arith.constant 0 : index
    %c0_8 = arith.constant 0 : index
    %7 = vector.load %arg5[%c0_7, %c0_8] : memref<1x32xf32, #tpu.memory_space<vmem>>, vector<1x32xf32>
    %8 = vector.broadcast %7 : vector<1x32xf32> to vector<8x32xf32>
    %9 = arith.addf %6, %8 : vector<8x32xf32>
    %10 = arith.truncf %3 : vector<8x32xf32> to vector<8x32xbf16>
    %c0_9 = arith.constant 0 : index
    %c0_10 = arith.constant 0 : index
    %11 = vector.load %arg6[%c0_9, %c0_10] : memref<32x64xbf16, #tpu.memory_space<vmem>>, vector<32x64xbf16>
    %cst_11 = arith.constant dense<0.000000e+00> : vector<8x64xf32>
    %12 = tpu.matmul %10, %11, %cst_11 {dimension_numbers = #tpu.dot_dimension_numbers<[1], [0], [0], [1], [0, 0, 1, 1], [], []>} : vector<8x32xbf16>, vector<32x64xbf16>, vector<8x64xf32> -> vector<8x64xf32>
    %c0_12 = arith.constant 0 : index
    %c0_13 = arith.constant 0 : index
    %13 = vector.load %arg7[%c0_12, %c0_13] : memref<1x64xf32, #tpu.memory_space<vmem>>, vector<1x64xf32>
    %14 = vector.broadcast %13 : vector<1x64xf32> to vector<8x64xf32>
    %15 = arith.addf %12, %14 : vector<8x64xf32>
    %16 = arith.truncf %9 : vector<8x32xf32> to vector<8x32xbf16>
    %17 = vector.extract_strided_slice %15 {offsets = [0, 0], sizes = [8, 32], strides = [1, 1]} : vector<8x64xf32> to vector<8x32xf32>
    %18 = arith.truncf %17 : vector<8x32xf32> to vector<8x32xbf16>
    %19 = vector.extract_strided_slice %15 {offsets = [0, 32], sizes = [8, 32], strides = [1, 1]} : vector<8x64xf32> to vector<8x32xf32>
    %20 = arith.truncf %19 : vector<8x32xf32> to vector<8x32xbf16>
    %21 = vector.extract_strided_slice %16 {offsets = [0, 0], sizes = [8, 8], strides = [1, 1]} : vector<8x32xbf16> to vector<8x8xbf16>
    %22 = vector.extract_strided_slice %18 {offsets = [0, 0], sizes = [8, 8], strides = [1, 1]} : vector<8x32xbf16> to vector<8x8xbf16>
    %cst_14 = arith.constant dense<0.000000e+00> : vector<8x8xf32>
    %23 = tpu.matmul %21, %22, %cst_14 {dimension_numbers = #tpu.dot_dimension_numbers<[1], [1], [0], [0], [0, 0, 1, 0], [], []>} : vector<8x8xbf16>, vector<8x8xbf16>, vector<8x8xf32> -> vector<8x8xf32>
    %cst_15 = arith.constant dense<0xFF800000> : vector<8xf32>
    %24 = vector.multi_reduction <maximumf>, %23, %cst_15 [1] : vector<8x8xf32> to vector<8xf32>
    %25 = vector.shape_cast %24 : vector<8xf32> to vector<8x1xf32>
    %26 = vector.broadcast %25 : vector<8x1xf32> to vector<8x8xf32>
    %27 = arith.subf %23, %26 : vector<8x8xf32>
    %28 = math.exp %27 : vector<8x8xf32>
    %cst_16 = arith.constant dense<0.000000e+00> : vector<8xf32>
    %29 = vector.multi_reduction <add>, %28, %cst_16 [1] : vector<8x8xf32> to vector<8xf32>
    %30 = vector.shape_cast %29 : vector<8xf32> to vector<8x1xf32>
    %31 = vector.broadcast %30 : vector<8x1xf32> to vector<8x8xf32>
    %32 = arith.divf %28, %31 : vector<8x8xf32>
    %c0_17 = arith.constant 0 : index
    %c0_18 = arith.constant 0 : index
    %c0_19 = arith.constant 0 : index
    %c0_20 = arith.constant 0 : index
    %33 = vector.load %arg13[%c0_17, %c0_18, %c0_19, %c0_20] : memref<1x4x8x8xf32, #tpu.memory_space<vmem>>, vector<1x1x8x8xf32>
    %34 = vector.shape_cast %33 : vector<1x1x8x8xf32> to vector<8x8xf32>
    %35 = vector.shape_cast %32 : vector<8x8xf32> to vector<1x1x8x8xf32>
    tpu.vector_store %arg13[%c0_17, %c0_18, %c0_19, %c0_20], %35 {strides = array<i32>} : memref<1x4x8x8xf32, #tpu.memory_space<vmem>>, vector<1x1x8x8xf32>,
    %36 = arith.truncf %32 : vector<8x8xf32> to vector<8x8xbf16>
    %37 = vector.extract_strided_slice %20 {offsets = [0, 0], sizes = [8, 8], strides = [1, 1]} : vector<8x32xbf16> to vector<8x8xbf16>
    %cst_21 = arith.constant dense<0.000000e+00> : vector<8x8xf32>
    %38 = tpu.matmul %36, %37, %cst_21 {dimension_numbers = #tpu.dot_dimension_numbers<[1], [0], [0], [1], [0, 0, 1, 1], [], []>} : vector<8x8xbf16>, vector<8x8xbf16>, vector<8x8xf32> -> vector<8x8xf32>
    %c0_22 = arith.constant 0 : index
    %c0_23 = arith.constant 0 : index
    %39 = vector.load %arg14[%c0_22, %c0_23] : memref<8x32xf32, #tpu.memory_space<vmem>>, vector<8x8xf32>
    tpu.vector_store %arg14[%c0_22, %c0_23], %38 {strides = array<i32>} : memref<8x32xf32, #tpu.memory_space<vmem>>, vector<8x8xf32>,
    %40 = vector.extract_strided_slice %16 {offsets = [0, 8], sizes = [8, 8], strides = [1, 1]} : vector<8x32xbf16> to vector<8x8xbf16>
    %41 = vector.extract_strided_slice %18 {offsets = [0, 8], sizes = [8, 8], strides = [1, 1]} : vector<8x32xbf16> to vector<8x8xbf16>
    %cst_24 = arith.constant dense<0.000000e+00> : vector<8x8xf32>
    %42 = tpu.matmul %40, %41, %cst_24 {dimension_numbers = #tpu.dot_dimension_numbers<[1], [1], [0], [0], [0, 0, 1, 0], [], []>} : vector<8x8xbf16>, vector<8x8xbf16>, vector<8x8xf32> -> vector<8x8xf32>
    %cst_25 = arith.constant dense<0xFF800000> : vector<8xf32>
    %43 = vector.multi_reduction <maximumf>, %42, %cst_25 [1] : vector<8x8xf32> to vector<8xf32>
    %44 = vector.shape_cast %43 : vector<8xf32> to vector<8x1xf32>
    %45 = vector.broadcast %44 : vector<8x1xf32> to vector<8x8xf32>
    %46 = arith.subf %42, %45 : vector<8x8xf32>
    %47 = math.exp %46 : vector<8x8xf32>
    %cst_26 = arith.constant dense<0.000000e+00> : vector<8xf32>
    %48 = vector.multi_reduction <add>, %47, %cst_26 [1] : vector<8x8xf32> to vector<8xf32>
    %49 = vector.shape_cast %48 : vector<8xf32> to vector<8x1xf32>
    %50 = vector.broadcast %49 : vector<8x1xf32> to vector<8x8xf32>
    %51 = arith.divf %47, %50 : vector<8x8xf32>
    %c0_27 = arith.constant 0 : index
    %c1 = arith.constant 1 : index
    %c0_28 = arith.constant 0 : index
    %c0_29 = arith.constant 0 : index
    %52 = vector.load %arg13[%c0_27, %c1, %c0_28, %c0_29] : memref<1x4x8x8xf32, #tpu.memory_space<vmem>>, vector<1x1x8x8xf32>
    %53 = vector.shape_cast %52 : vector<1x1x8x8xf32> to vector<8x8xf32>
    %54 = vector.shape_cast %51 : vector<8x8xf32> to vector<1x1x8x8xf32>
    tpu.vector_store %arg13[%c0_27, %c1, %c0_28, %c0_29], %54 {strides = array<i32>} : memref<1x4x8x8xf32, #tpu.memory_space<vmem>>, vector<1x1x8x8xf32>,
    %55 = arith.truncf %51 : vector<8x8xf32> to vector<8x8xbf16>
    %56 = vector.extract_strided_slice %20 {offsets = [0, 8], sizes = [8, 8], strides = [1, 1]} : vector<8x32xbf16> to vector<8x8xbf16>
    %cst_30 = arith.constant dense<0.000000e+00> : vector<8x8xf32>
    %57 = tpu.matmul %55, %56, %cst_30 {dimension_numbers = #tpu.dot_dimension_numbers<[1], [0], [0], [1], [0, 0, 1, 1], [], []>} : vector<8x8xbf16>, vector<8x8xbf16>, vector<8x8xf32> -> vector<8x8xf32>
    %c0_31 = arith.constant 0 : index
    %c8 = arith.constant 8 : index
    %58 = vector.load %arg14[%c0_31, %c8] : memref<8x32xf32, #tpu.memory_space<vmem>>, vector<8x8xf32>
    tpu.vector_store %arg14[%c0_31, %c8], %57 {strides = array<i32>} : memref<8x32xf32, #tpu.memory_space<vmem>>, vector<8x8xf32>,
    %59 = vector.extract_strided_slice %16 {offsets = [0, 16], sizes = [8, 8], strides = [1, 1]} : vector<8x32xbf16> to vector<8x8xbf16>
    %60 = vector.extract_strided_slice %18 {offsets = [0, 16], sizes = [8, 8], strides = [1, 1]} : vector<8x32xbf16> to vector<8x8xbf16>
    %cst_32 = arith.constant dense<0.000000e+00> : vector<8x8xf32>
    %61 = tpu.matmul %59, %60, %cst_32 {dimension_numbers = #tpu.dot_dimension_numbers<[1], [1], [0], [0], [0, 0, 1, 0], [], []>} : vector<8x8xbf16>, vector<8x8xbf16>, vector<8x8xf32> -> vector<8x8xf32>
    %cst_33 = arith.constant dense<0xFF800000> : vector<8xf32>
    %62 = vector.multi_reduction <maximumf>, %61, %cst_33 [1] : vector<8x8xf32> to vector<8xf32>
    %63 = vector.shape_cast %62 : vector<8xf32> to vector<8x1xf32>
    %64 = vector.broadcast %63 : vector<8x1xf32> to vector<8x8xf32>
    %65 = arith.subf %61, %64 : vector<8x8xf32>
    %66 = math.exp %65 : vector<8x8xf32>
    %cst_34 = arith.constant dense<0.000000e+00> : vector<8xf32>
    %67 = vector.multi_reduction <add>, %66, %cst_34 [1] : vector<8x8xf32> to vector<8xf32>
    %68 = vector.shape_cast %67 : vector<8xf32> to vector<8x1xf32>
    %69 = vector.broadcast %68 : vector<8x1xf32> to vector<8x8xf32>
    %70 = arith.divf %66, %69 : vector<8x8xf32>
    %c0_35 = arith.constant 0 : index
    %c2 = arith.constant 2 : index
    %c0_36 = arith.constant 0 : index
    %c0_37 = arith.constant 0 : index
    %71 = vector.load %arg13[%c0_35, %c2, %c0_36, %c0_37] : memref<1x4x8x8xf32, #tpu.memory_space<vmem>>, vector<1x1x8x8xf32>
    %72 = vector.shape_cast %71 : vector<1x1x8x8xf32> to vector<8x8xf32>
    %73 = vector.shape_cast %70 : vector<8x8xf32> to vector<1x1x8x8xf32>
    tpu.vector_store %arg13[%c0_35, %c2, %c0_36, %c0_37], %73 {strides = array<i32>} : memref<1x4x8x8xf32, #tpu.memory_space<vmem>>, vector<1x1x8x8xf32>,
    %74 = arith.truncf %70 : vector<8x8xf32> to vector<8x8xbf16>
    %75 = vector.extract_strided_slice %20 {offsets = [0, 16], sizes = [8, 8], strides = [1, 1]} : vector<8x32xbf16> to vector<8x8xbf16>
    %cst_38 = arith.constant dense<0.000000e+00> : vector<8x8xf32>
    %76 = tpu.matmul %74, %75, %cst_38 {dimension_numbers = #tpu.dot_dimension_numbers<[1], [0], [0], [1], [0, 0, 1, 1], [], []>} : vector<8x8xbf16>, vector<8x8xbf16>, vector<8x8xf32> -> vector<8x8xf32>
    %c0_39 = arith.constant 0 : index
    %c16 = arith.constant 16 : index
    %77 = vector.load %arg14[%c0_39, %c16] : memref<8x32xf32, #tpu.memory_space<vmem>>, vector<8x8xf32>
    tpu.vector_store %arg14[%c0_39, %c16], %76 {strides = array<i32>} : memref<8x32xf32, #tpu.memory_space<vmem>>, vector<8x8xf32>,
    %78 = vector.extract_strided_slice %16 {offsets = [0, 24], sizes = [8, 8], strides = [1, 1]} : vector<8x32xbf16> to vector<8x8xbf16>
    %79 = vector.extract_strided_slice %18 {offsets = [0, 24], sizes = [8, 8], strides = [1, 1]} : vector<8x32xbf16> to vector<8x8xbf16>
    %cst_40 = arith.constant dense<0.000000e+00> : vector<8x8xf32>
    %80 = tpu.matmul %78, %79, %cst_40 {dimension_numbers = #tpu.dot_dimension_numbers<[1], [1], [0], [0], [0, 0, 1, 0], [], []>} : vector<8x8xbf16>, vector<8x8xbf16>, vector<8x8xf32> -> vector<8x8xf32>
    %cst_41 = arith.constant dense<0xFF800000> : vector<8xf32>
    %81 = vector.multi_reduction <maximumf>, %80, %cst_41 [1] : vector<8x8xf32> to vector<8xf32>
    %82 = vector.shape_cast %81 : vector<8xf32> to vector<8x1xf32>
    %83 = vector.broadcast %82 : vector<8x1xf32> to vector<8x8xf32>
    %84 = arith.subf %80, %83 : vector<8x8xf32>
    %85 = math.exp %84 : vector<8x8xf32>
    %cst_42 = arith.constant dense<0.000000e+00> : vector<8xf32>
    %86 = vector.multi_reduction <add>, %85, %cst_42 [1] : vector<8x8xf32> to vector<8xf32>
    %87 = vector.shape_cast %86 : vector<8xf32> to vector<8x1xf32>
    %88 = vector.broadcast %87 : vector<8x1xf32> to vector<8x8xf32>
    %89 = arith.divf %85, %88 : vector<8x8xf32>
    %c0_43 = arith.constant 0 : index
    %c3 = arith.constant 3 : index
    %c0_44 = arith.constant 0 : index
    %c0_45 = arith.constant 0 : index
    %90 = vector.load %arg13[%c0_43, %c3, %c0_44, %c0_45] : memref<1x4x8x8xf32, #tpu.memory_space<vmem>>, vector<1x1x8x8xf32>
    %91 = vector.shape_cast %90 : vector<1x1x8x8xf32> to vector<8x8xf32>
    %92 = vector.shape_cast %89 : vector<8x8xf32> to vector<1x1x8x8xf32>
    tpu.vector_store %arg13[%c0_43, %c3, %c0_44, %c0_45], %92 {strides = array<i32>} : memref<1x4x8x8xf32, #tpu.memory_space<vmem>>, vector<1x1x8x8xf32>,
    %93 = arith.truncf %89 : vector<8x8xf32> to vector<8x8xbf16>
    %94 = vector.extract_strided_slice %20 {offsets = [0, 24], sizes = [8, 8], strides = [1, 1]} : vector<8x32xbf16> to vector<8x8xbf16>
    %cst_46 = arith.constant dense<0.000000e+00> : vector<8x8xf32>
    %95 = tpu.matmul %93, %94, %cst_46 {dimension_numbers = #tpu.dot_dimension_numbers<[1], [0], [0], [1], [0, 0, 1, 1], [], []>} : vector<8x8xbf16>, vector<8x8xbf16>, vector<8x8xf32> -> vector<8x8xf32>
    %c0_47 = arith.constant 0 : index
    %c24 = arith.constant 24 : index
    %96 = vector.load %arg14[%c0_47, %c24] : memref<8x32xf32, #tpu.memory_space<vmem>>, vector<8x8xf32>
    tpu.vector_store %arg14[%c0_47, %c24], %95 {strides = array<i32>} : memref<8x32xf32, #tpu.memory_space<vmem>>, vector<8x8xf32>,
    %c0_48 = arith.constant 0 : index
    %c0_49 = arith.constant 0 : index
    %97 = vector.load %arg14[%c0_48, %c0_49] : memref<8x32xf32, #tpu.memory_space<vmem>>, vector<8x32xf32>
    %98 = arith.truncf %97 : vector<8x32xf32> to vector<8x32xbf16>
    %c0_50 = arith.constant 0 : index
    %c0_51 = arith.constant 0 : index
    %99 = vector.load %arg8[%c0_50, %c0_51] : memref<32x32xbf16, #tpu.memory_space<vmem>>, vector<32x32xbf16>
    %cst_52 = arith.constant dense<0.000000e+00> : vector<8x32xf32>
    %100 = tpu.matmul %98, %99, %cst_52 {dimension_numbers = #tpu.dot_dimension_numbers<[1], [0], [0], [1], [0, 0, 1, 1], [], []>} : vector<8x32xbf16>, vector<32x32xbf16>, vector<8x32xf32> -> vector<8x32xf32>
    %c0_53 = arith.constant 0 : index
    %c0_54 = arith.constant 0 : index
    %101 = vector.load %arg9[%c0_53, %c0_54] : memref<1x32xf32, #tpu.memory_space<vmem>>, vector<1x32xf32>
    %102 = vector.broadcast %101 : vector<1x32xf32> to vector<8x32xf32>
    %103 = arith.addf %100, %102 : vector<8x32xf32>
    %104 = arith.addf %1, %103 : vector<8x32xf32>
    %cst_55 = arith.constant dense<0.000000e+00> : vector<8xf32>
    %105 = vector.multi_reduction <add>, %104, %cst_55 [1] : vector<8x32xf32> to vector<8xf32>
    %106 = vector.shape_cast %105 : vector<8xf32> to vector<8x1xf32>
    %cst_56 = arith.constant 3.200000e+01 : f32
    %107 = vector.broadcast %cst_56 : f32 to vector<8x1xf32>
    %108 = arith.divf %106, %107 : vector<8x1xf32>
    %109 = vector.broadcast %108 : vector<8x1xf32> to vector<8x32xf32>
    %110 = arith.subf %104, %109 : vector<8x32xf32>
    %111 = arith.mulf %110, %110 : vector<8x32xf32>
    %cst_57 = arith.constant dense<0.000000e+00> : vector<8xf32>
    %112 = vector.multi_reduction <add>, %111, %cst_57 [1] : vector<8x32xf32> to vector<8xf32>
    %113 = vector.shape_cast %112 : vector<8xf32> to vector<8x1xf32>
    %cst_58 = arith.constant 3.200000e+01 : f32
    %114 = vector.broadcast %cst_58 : f32 to vector<8x1xf32>
    %115 = arith.divf %113, %114 : vector<8x1xf32>
    %cst_59 = arith.constant 9.99999974E-6 : f32
    %116 = vector.broadcast %cst_59 : f32 to vector<8x1xf32>
    %117 = arith.addf %115, %116 : vector<8x1xf32>
    %118 = math.rsqrt %117 : vector<8x1xf32>
    %119 = vector.broadcast %108 : vector<8x1xf32> to vector<8x32xf32>
    %120 = arith.subf %104, %119 : vector<8x32xf32>
    %121 = vector.broadcast %118 : vector<8x1xf32> to vector<8x32xf32>
    %122 = arith.mulf %120, %121 : vector<8x32xf32>
    %c0_60 = arith.constant 0 : index
    %c0_61 = arith.constant 0 : index
    %123 = vector.load %arg10[%c0_60, %c0_61] : memref<1x32xf32, #tpu.memory_space<vmem>>, vector<1x32xf32>
    %124 = vector.broadcast %123 : vector<1x32xf32> to vector<8x32xf32>
    %125 = arith.mulf %122, %124 : vector<8x32xf32>
    %c0_62 = arith.constant 0 : index
    %c0_63 = arith.constant 0 : index
    %126 = vector.load %arg11[%c0_62, %c0_63] : memref<1x32xf32, #tpu.memory_space<vmem>>, vector<1x32xf32>
    %127 = vector.broadcast %126 : vector<1x32xf32> to vector<8x32xf32>
    %128 = arith.addf %125, %127 : vector<8x32xf32>
    %c0_64 = arith.constant 0 : index
    %c0_65 = arith.constant 0 : index
    %c0_66 = arith.constant 0 : index
    %129 = vector.load %arg12[%c0_64, %c0_65, %c0_66] : memref<1x8x32xf32, #tpu.memory_space<vmem>>, vector<1x8x32xf32>
    %130 = vector.shape_cast %129 : vector<1x8x32xf32> to vector<8x32xf32>
    %131 = vector.shape_cast %128 : vector<8x32xf32> to vector<1x8x32xf32>
    tpu.vector_store %arg12[%c0_64, %c0_65, %c0_66], %131 {strides = array<i32>} : memref<1x8x32xf32, #tpu.memory_space<vmem>>, vector<1x8x32xf32>,
    return
  }
  func.func @transform_0(%arg0: i32, %arg1: i32) -> (i32, i32, i32) {
    %c0_i32 = arith.constant 0 : i32
    %c0_i32_0 = arith.constant 0 : i32
    return %arg0, %arg1, %c0_i32 : i32, i32, i32
  }
  func.func @transform_1(%arg0: i32, %arg1: i32) -> (i32, i32, i32) {
    %c0_i32 = arith.constant 0 : i32
    %c0_i32_0 = arith.constant 0 : i32
    %c0_i32_1 = arith.constant 0 : i32
    return %arg0, %c0_i32, %c0_i32_0 : i32, i32, i32
  }
  func.func @transform_2(%arg0: i32, %arg1: i32) -> (i32, i32) {
    %c0_i32 = arith.constant 0 : i32
    %c0_i32_0 = arith.constant 0 : i32
    %c0_i32_1 = arith.constant 0 : i32
    return %c0_i32, %c0_i32_0 : i32, i32
  }
  func.func @transform_3(%arg0: i32, %arg1: i32) -> (i32, i32) {
    %c0_i32 = arith.constant 0 : i32
    %c0_i32_0 = arith.constant 0 : i32
    %c0_i32_1 = arith.constant 0 : i32
    return %c0_i32, %c0_i32_0 : i32, i32
  }
  func.func @transform_4(%arg0: i32, %arg1: i32) -> (i32, i32) {
    %c0_i32 = arith.constant 0 : i32
    %c0_i32_0 = arith.constant 0 : i32
    %c0_i32_1 = arith.constant 0 : i32
    return %c0_i32, %c0_i32_0 : i32, i32
  }
  func.func @transform_5(%arg0: i32, %arg1: i32) -> (i32, i32) {
    %c0_i32 = arith.constant 0 : i32
    %c0_i32_0 = arith.constant 0 : i32
    %c0_i32_1 = arith.constant 0 : i32
    return %c0_i32, %c0_i32_0 : i32, i32
  }
  func.func @transform_6(%arg0: i32, %arg1: i32) -> (i32, i32) {
    %c0_i32 = arith.constant 0 : i32
    %c0_i32_0 = arith.constant 0 : i32
    %c0_i32_1 = arith.constant 0 : i32
    return %c0_i32, %c0_i32_0 : i32, i32
  }
  func.func @transform_7(%arg0: i32, %arg1: i32) -> (i32, i32) {
    %c0_i32 = arith.constant 0 : i32
    %c0_i32_0 = arith.constant 0 : i32
    %c0_i32_1 = arith.constant 0 : i32
    return %c0_i32, %c0_i32_0 : i32, i32
  }
  func.func @transform_8(%arg0: i32, %arg1: i32) -> (i32, i32) {
    %c0_i32 = arith.constant 0 : i32
    %c0_i32_0 = arith.constant 0 : i32
    %c0_i32_1 = arith.constant 0 : i32
    return %c0_i32, %c0_i32_0 : i32, i32
  }
  func.func @transform_9(%arg0: i32, %arg1: i32) -> (i32, i32) {
    %c0_i32 = arith.constant 0 : i32
    %c0_i32_0 = arith.constant 0 : i32
    %c0_i32_1 = arith.constant 0 : i32
    return %c0_i32, %c0_i32_0 : i32, i32
  }
  func.func @transform_10(%arg0: i32, %arg1: i32) -> (i32, i32, i32) {
    %c0_i32 = arith.constant 0 : i32
    %c0_i32_0 = arith.constant 0 : i32
    return %arg0, %arg1, %c0_i32 : i32, i32, i32
  }
  func.func @transform_11(%arg0: i32, %arg1: i32) -> (i32, i32, i32, i32) {
    %c0_i32 = arith.constant 0 : i32
    %c0_i32_0 = arith.constant 0 : i32
    %c0_i32_1 = arith.constant 0 : i32
    return %arg0, %c0_i32, %arg1, %c0_i32_0 : i32, i32, i32, i32
  }
}

module attributes {stable_mosaic.version = 11 : i64} {
  func.func @_fused_attn_kernel(%arg0: i32, %arg1: i32, %arg2: memref<1x8x32xf32, #tpu.memory_space<vmem>>, %arg3: memref<1x16x32xf32, #tpu.memory_space<vmem>>, %arg4: memref<32x32xbf16, #tpu.memory_space<vmem>>, %arg5: memref<1x32xf32, #tpu.memory_space<vmem>>, %arg6: memref<32x64xbf16, #tpu.memory_space<vmem>>, %arg7: memref<1x64xf32, #tpu.memory_space<vmem>>, %arg8: memref<32x32xbf16, #tpu.memory_space<vmem>>, %arg9: memref<1x32xf32, #tpu.memory_space<vmem>>, %arg10: memref<1x32xf32, #tpu.memory_space<vmem>>, %arg11: memref<1x32xf32, #tpu.memory_space<vmem>>, %arg12: memref<1x8x32xf32, #tpu.memory_space<vmem>>, %arg13: memref<1x4x8x16xf32, #tpu.memory_space<vmem>>, %arg14: memref<8x32xf32, #tpu.memory_space<vmem>>) attributes {dimension_semantics = [#tpu.dimension_semantics<parallel>, #tpu.dimension_semantics<parallel>], iteration_bounds = array<i64: 2, 1>, scalar_prefetch = 0 : i64, scratch_operands = 1 : i64, tpu.core_type = #tpu.core_type<tc>, window_params = [{transform_indices = @transform_0, window_bounds = array<i64: 1, 8, 32>}, {transform_indices = @transform_1, window_bounds = array<i64: 1, 16, 32>}, {pipeline_mode = #tpu.pipeline_mode<synchronous>, transform_indices = @transform_2, window_bounds = array<i64: 32, 32>}, {pipeline_mode = #tpu.pipeline_mode<synchronous>, transform_indices = @transform_3, window_bounds = array<i64: 1, 32>}, {pipeline_mode = #tpu.pipeline_mode<synchronous>, transform_indices = @transform_4, window_bounds = array<i64: 32, 64>}, {pipeline_mode = #tpu.pipeline_mode<synchronous>, transform_indices = @transform_5, window_bounds = array<i64: 1, 64>}, {pipeline_mode = #tpu.pipeline_mode<synchronous>, transform_indices = @transform_6, window_bounds = array<i64: 32, 32>}, {pipeline_mode = #tpu.pipeline_mode<synchronous>, transform_indices = @transform_7, window_bounds = array<i64: 1, 32>}, {pipeline_mode = #tpu.pipeline_mode<synchronous>, transform_indices = @transform_8, window_bounds = array<i64: 1, 32>}, {pipeline_mode = #tpu.pipeline_mode<synchronous>, transform_indices = @transform_9, window_bounds = array<i64: 1, 32>}, {transform_indices = @transform_10, window_bounds = array<i64: 1, 8, 32>}, {transform_indices = @transform_11, window_bounds = array<i64: 1, 4, 8, 16>}]} {
    %c0 = arith.constant 0 : index
    %c0_0 = arith.constant 0 : index
    %c0_1 = arith.constant 0 : index
    %0 = vector.load %arg2[%c0, %c0_0, %c0_1] : memref<1x8x32xf32, #tpu.memory_space<vmem>>, vector<1x8x32xf32>
    %1 = vector.shape_cast %0 : vector<1x8x32xf32> to vector<8x32xf32>
    %c0_2 = arith.constant 0 : index
    %c0_3 = arith.constant 0 : index
    %c0_4 = arith.constant 0 : index
    %2 = vector.load %arg3[%c0_2, %c0_3, %c0_4] : memref<1x16x32xf32, #tpu.memory_space<vmem>>, vector<1x16x32xf32>
    %3 = vector.shape_cast %2 : vector<1x16x32xf32> to vector<16x32xf32>
    %4 = arith.truncf %1 : vector<8x32xf32> to vector<8x32xbf16>
    %c0_5 = arith.constant 0 : index
    %c0_6 = arith.constant 0 : index
    %5 = vector.load %arg4[%c0_5, %c0_6] : memref<32x32xbf16, #tpu.memory_space<vmem>>, vector<32x32xbf16>
    %cst = arith.constant dense<0.000000e+00> : vector<8x32xf32>
    %6 = tpu.matmul %4, %5, %cst {dimension_numbers = #tpu.dot_dimension_numbers<[1], [0], [0], [1], [0, 0, 1, 1], [], []>} : vector<8x32xbf16>, vector<32x32xbf16>, vector<8x32xf32> -> vector<8x32xf32>
    %c0_7 = arith.constant 0 : index
    %c0_8 = arith.constant 0 : index
    %7 = vector.load %arg5[%c0_7, %c0_8] : memref<1x32xf32, #tpu.memory_space<vmem>>, vector<1x32xf32>
    %8 = vector.broadcast %7 : vector<1x32xf32> to vector<8x32xf32>
    %9 = arith.addf %6, %8 : vector<8x32xf32>
    %10 = arith.truncf %3 : vector<16x32xf32> to vector<16x32xbf16>
    %c0_9 = arith.constant 0 : index
    %c0_10 = arith.constant 0 : index
    %11 = vector.load %arg6[%c0_9, %c0_10] : memref<32x64xbf16, #tpu.memory_space<vmem>>, vector<32x64xbf16>
    %cst_11 = arith.constant dense<0.000000e+00> : vector<16x64xf32>
    %12 = tpu.matmul %10, %11, %cst_11 {dimension_numbers = #tpu.dot_dimension_numbers<[1], [0], [0], [1], [0, 0, 1, 1], [], []>} : vector<16x32xbf16>, vector<32x64xbf16>, vector<16x64xf32> -> vector<16x64xf32>
    %c0_12 = arith.constant 0 : index
    %c0_13 = arith.constant 0 : index
    %13 = vector.load %arg7[%c0_12, %c0_13] : memref<1x64xf32, #tpu.memory_space<vmem>>, vector<1x64xf32>
    %14 = vector.broadcast %13 : vector<1x64xf32> to vector<16x64xf32>
    %15 = arith.addf %12, %14 : vector<16x64xf32>
    %16 = arith.truncf %9 : vector<8x32xf32> to vector<8x32xbf16>
    %17 = vector.extract_strided_slice %15 {offsets = [0, 0], sizes = [16, 32], strides = [1, 1]} : vector<16x64xf32> to vector<16x32xf32>
    %18 = arith.truncf %17 : vector<16x32xf32> to vector<16x32xbf16>
    %19 = vector.extract_strided_slice %15 {offsets = [0, 32], sizes = [16, 32], strides = [1, 1]} : vector<16x64xf32> to vector<16x32xf32>
    %20 = arith.truncf %19 : vector<16x32xf32> to vector<16x32xbf16>
    %21 = vector.extract_strided_slice %16 {offsets = [0, 0], sizes = [8, 8], strides = [1, 1]} : vector<8x32xbf16> to vector<8x8xbf16>
    %22 = vector.extract_strided_slice %18 {offsets = [0, 0], sizes = [16, 8], strides = [1, 1]} : vector<16x32xbf16> to vector<16x8xbf16>
    %cst_14 = arith.constant dense<0.000000e+00> : vector<8x16xf32>
    %23 = tpu.matmul %21, %22, %cst_14 {dimension_numbers = #tpu.dot_dimension_numbers<[1], [1], [0], [0], [0, 0, 1, 0], [], []>} : vector<8x8xbf16>, vector<16x8xbf16>, vector<8x16xf32> -> vector<8x16xf32>
    %cst_15 = arith.constant dense<0xFF800000> : vector<8xf32>
    %24 = vector.multi_reduction <maximumf>, %23, %cst_15 [1] : vector<8x16xf32> to vector<8xf32>
    %25 = vector.shape_cast %24 : vector<8xf32> to vector<8x1xf32>
    %26 = vector.broadcast %25 : vector<8x1xf32> to vector<8x16xf32>
    %27 = arith.subf %23, %26 : vector<8x16xf32>
    %28 = math.exp %27 : vector<8x16xf32>
    %cst_16 = arith.constant dense<0.000000e+00> : vector<8xf32>
    %29 = vector.multi_reduction <add>, %28, %cst_16 [1] : vector<8x16xf32> to vector<8xf32>
    %30 = vector.shape_cast %29 : vector<8xf32> to vector<8x1xf32>
    %31 = vector.broadcast %30 : vector<8x1xf32> to vector<8x16xf32>
    %32 = arith.divf %28, %31 : vector<8x16xf32>
    %c0_17 = arith.constant 0 : index
    %c0_18 = arith.constant 0 : index
    %c0_19 = arith.constant 0 : index
    %c0_20 = arith.constant 0 : index
    %33 = vector.load %arg13[%c0_17, %c0_18, %c0_19, %c0_20] : memref<1x4x8x16xf32, #tpu.memory_space<vmem>>, vector<1x1x8x16xf32>
    %34 = vector.shape_cast %33 : vector<1x1x8x16xf32> to vector<8x16xf32>
    %35 = vector.shape_cast %32 : vector<8x16xf32> to vector<1x1x8x16xf32>
    tpu.vector_store %arg13[%c0_17, %c0_18, %c0_19, %c0_20], %35 {strides = array<i32>} : memref<1x4x8x16xf32, #tpu.memory_space<vmem>>, vector<1x1x8x16xf32>,
    %36 = arith.truncf %32 : vector<8x16xf32> to vector<8x16xbf16>
    %37 = vector.extract_strided_slice %20 {offsets = [0, 0], sizes = [16, 8], strides = [1, 1]} : vector<16x32xbf16> to vector<16x8xbf16>
    %cst_21 = arith.constant dense<0.000000e+00> : vector<8x8xf32>
    %38 = tpu.matmul %36, %37, %cst_21 {dimension_numbers = #tpu.dot_dimension_numbers<[1], [0], [0], [1], [0, 0, 1, 1], [], []>} : vector<8x16xbf16>, vector<16x8xbf16>, vector<8x8xf32> -> vector<8x8xf32>
    %c0_22 = arith.constant 0 : index
    %c0_23 = arith.constant 0 : index
    %39 = vector.load %arg14[%c0_22, %c0_23] : memref<8x32xf32, #tpu.memory_space<vmem>>, vector<8x8xf32>
    tpu.vector_store %arg14[%c0_22, %c0_23], %38 {strides = array<i32>} : memref<8x32xf32, #tpu.memory_space<vmem>>, vector<8x8xf32>,
    %40 = vector.extract_strided_slice %16 {offsets = [0, 8], sizes = [8, 8], strides = [1, 1]} : vector<8x32xbf16> to vector<8x8xbf16>
    %41 = vector.extract_strided_slice %18 {offsets = [0, 8], sizes = [16, 8], strides = [1, 1]} : vector<16x32xbf16> to vector<16x8xbf16>
    %cst_24 = arith.constant dense<0.000000e+00> : vector<8x16xf32>
    %42 = tpu.matmul %40, %41, %cst_24 {dimension_numbers = #tpu.dot_dimension_numbers<[1], [1], [0], [0], [0, 0, 1, 0], [], []>} : vector<8x8xbf16>, vector<16x8xbf16>, vector<8x16xf32> -> vector<8x16xf32>
    %cst_25 = arith.constant dense<0xFF800000> : vector<8xf32>
    %43 = vector.multi_reduction <maximumf>, %42, %cst_25 [1] : vector<8x16xf32> to vector<8xf32>
    %44 = vector.shape_cast %43 : vector<8xf32> to vector<8x1xf32>
    %45 = vector.broadcast %44 : vector<8x1xf32> to vector<8x16xf32>
    %46 = arith.subf %42, %45 : vector<8x16xf32>
    %47 = math.exp %46 : vector<8x16xf32>
    %cst_26 = arith.constant dense<0.000000e+00> : vector<8xf32>
    %48 = vector.multi_reduction <add>, %47, %cst_26 [1] : vector<8x16xf32> to vector<8xf32>
    %49 = vector.shape_cast %48 : vector<8xf32> to vector<8x1xf32>
    %50 = vector.broadcast %49 : vector<8x1xf32> to vector<8x16xf32>
    %51 = arith.divf %47, %50 : vector<8x16xf32>
    %c0_27 = arith.constant 0 : index
    %c1 = arith.constant 1 : index
    %c0_28 = arith.constant 0 : index
    %c0_29 = arith.constant 0 : index
    %52 = vector.load %arg13[%c0_27, %c1, %c0_28, %c0_29] : memref<1x4x8x16xf32, #tpu.memory_space<vmem>>, vector<1x1x8x16xf32>
    %53 = vector.shape_cast %52 : vector<1x1x8x16xf32> to vector<8x16xf32>
    %54 = vector.shape_cast %51 : vector<8x16xf32> to vector<1x1x8x16xf32>
    tpu.vector_store %arg13[%c0_27, %c1, %c0_28, %c0_29], %54 {strides = array<i32>} : memref<1x4x8x16xf32, #tpu.memory_space<vmem>>, vector<1x1x8x16xf32>,
    %55 = arith.truncf %51 : vector<8x16xf32> to vector<8x16xbf16>
    %56 = vector.extract_strided_slice %20 {offsets = [0, 8], sizes = [16, 8], strides = [1, 1]} : vector<16x32xbf16> to vector<16x8xbf16>
    %cst_30 = arith.constant dense<0.000000e+00> : vector<8x8xf32>
    %57 = tpu.matmul %55, %56, %cst_30 {dimension_numbers = #tpu.dot_dimension_numbers<[1], [0], [0], [1], [0, 0, 1, 1], [], []>} : vector<8x16xbf16>, vector<16x8xbf16>, vector<8x8xf32> -> vector<8x8xf32>
    %c0_31 = arith.constant 0 : index
    %c8 = arith.constant 8 : index
    %58 = vector.load %arg14[%c0_31, %c8] : memref<8x32xf32, #tpu.memory_space<vmem>>, vector<8x8xf32>
    tpu.vector_store %arg14[%c0_31, %c8], %57 {strides = array<i32>} : memref<8x32xf32, #tpu.memory_space<vmem>>, vector<8x8xf32>,
    %59 = vector.extract_strided_slice %16 {offsets = [0, 16], sizes = [8, 8], strides = [1, 1]} : vector<8x32xbf16> to vector<8x8xbf16>
    %60 = vector.extract_strided_slice %18 {offsets = [0, 16], sizes = [16, 8], strides = [1, 1]} : vector<16x32xbf16> to vector<16x8xbf16>
    %cst_32 = arith.constant dense<0.000000e+00> : vector<8x16xf32>
    %61 = tpu.matmul %59, %60, %cst_32 {dimension_numbers = #tpu.dot_dimension_numbers<[1], [1], [0], [0], [0, 0, 1, 0], [], []>} : vector<8x8xbf16>, vector<16x8xbf16>, vector<8x16xf32> -> vector<8x16xf32>
    %cst_33 = arith.constant dense<0xFF800000> : vector<8xf32>
    %62 = vector.multi_reduction <maximumf>, %61, %cst_33 [1] : vector<8x16xf32> to vector<8xf32>
    %63 = vector.shape_cast %62 : vector<8xf32> to vector<8x1xf32>
    %64 = vector.broadcast %63 : vector<8x1xf32> to vector<8x16xf32>
    %65 = arith.subf %61, %64 : vector<8x16xf32>
    %66 = math.exp %65 : vector<8x16xf32>
    %cst_34 = arith.constant dense<0.000000e+00> : vector<8xf32>
    %67 = vector.multi_reduction <add>, %66, %cst_34 [1] : vector<8x16xf32> to vector<8xf32>
    %68 = vector.shape_cast %67 : vector<8xf32> to vector<8x1xf32>
    %69 = vector.broadcast %68 : vector<8x1xf32> to vector<8x16xf32>
    %70 = arith.divf %66, %69 : vector<8x16xf32>
    %c0_35 = arith.constant 0 : index
    %c2 = arith.constant 2 : index
    %c0_36 = arith.constant 0 : index
    %c0_37 = arith.constant 0 : index
    %71 = vector.load %arg13[%c0_35, %c2, %c0_36, %c0_37] : memref<1x4x8x16xf32, #tpu.memory_space<vmem>>, vector<1x1x8x16xf32>
    %72 = vector.shape_cast %71 : vector<1x1x8x16xf32> to vector<8x16xf32>
    %73 = vector.shape_cast %70 : vector<8x16xf32> to vector<1x1x8x16xf32>
    tpu.vector_store %arg13[%c0_35, %c2, %c0_36, %c0_37], %73 {strides = array<i32>} : memref<1x4x8x16xf32, #tpu.memory_space<vmem>>, vector<1x1x8x16xf32>,
    %74 = arith.truncf %70 : vector<8x16xf32> to vector<8x16xbf16>
    %75 = vector.extract_strided_slice %20 {offsets = [0, 16], sizes = [16, 8], strides = [1, 1]} : vector<16x32xbf16> to vector<16x8xbf16>
    %cst_38 = arith.constant dense<0.000000e+00> : vector<8x8xf32>
    %76 = tpu.matmul %74, %75, %cst_38 {dimension_numbers = #tpu.dot_dimension_numbers<[1], [0], [0], [1], [0, 0, 1, 1], [], []>} : vector<8x16xbf16>, vector<16x8xbf16>, vector<8x8xf32> -> vector<8x8xf32>
    %c0_39 = arith.constant 0 : index
    %c16 = arith.constant 16 : index
    %77 = vector.load %arg14[%c0_39, %c16] : memref<8x32xf32, #tpu.memory_space<vmem>>, vector<8x8xf32>
    tpu.vector_store %arg14[%c0_39, %c16], %76 {strides = array<i32>} : memref<8x32xf32, #tpu.memory_space<vmem>>, vector<8x8xf32>,
    %78 = vector.extract_strided_slice %16 {offsets = [0, 24], sizes = [8, 8], strides = [1, 1]} : vector<8x32xbf16> to vector<8x8xbf16>
    %79 = vector.extract_strided_slice %18 {offsets = [0, 24], sizes = [16, 8], strides = [1, 1]} : vector<16x32xbf16> to vector<16x8xbf16>
    %cst_40 = arith.constant dense<0.000000e+00> : vector<8x16xf32>
    %80 = tpu.matmul %78, %79, %cst_40 {dimension_numbers = #tpu.dot_dimension_numbers<[1], [1], [0], [0], [0, 0, 1, 0], [], []>} : vector<8x8xbf16>, vector<16x8xbf16>, vector<8x16xf32> -> vector<8x16xf32>
    %cst_41 = arith.constant dense<0xFF800000> : vector<8xf32>
    %81 = vector.multi_reduction <maximumf>, %80, %cst_41 [1] : vector<8x16xf32> to vector<8xf32>
    %82 = vector.shape_cast %81 : vector<8xf32> to vector<8x1xf32>
    %83 = vector.broadcast %82 : vector<8x1xf32> to vector<8x16xf32>
    %84 = arith.subf %80, %83 : vector<8x16xf32>
    %85 = math.exp %84 : vector<8x16xf32>
    %cst_42 = arith.constant dense<0.000000e+00> : vector<8xf32>
    %86 = vector.multi_reduction <add>, %85, %cst_42 [1] : vector<8x16xf32> to vector<8xf32>
    %87 = vector.shape_cast %86 : vector<8xf32> to vector<8x1xf32>
    %88 = vector.broadcast %87 : vector<8x1xf32> to vector<8x16xf32>
    %89 = arith.divf %85, %88 : vector<8x16xf32>
    %c0_43 = arith.constant 0 : index
    %c3 = arith.constant 3 : index
    %c0_44 = arith.constant 0 : index
    %c0_45 = arith.constant 0 : index
    %90 = vector.load %arg13[%c0_43, %c3, %c0_44, %c0_45] : memref<1x4x8x16xf32, #tpu.memory_space<vmem>>, vector<1x1x8x16xf32>
    %91 = vector.shape_cast %90 : vector<1x1x8x16xf32> to vector<8x16xf32>
    %92 = vector.shape_cast %89 : vector<8x16xf32> to vector<1x1x8x16xf32>
    tpu.vector_store %arg13[%c0_43, %c3, %c0_44, %c0_45], %92 {strides = array<i32>} : memref<1x4x8x16xf32, #tpu.memory_space<vmem>>, vector<1x1x8x16xf32>,
    %93 = arith.truncf %89 : vector<8x16xf32> to vector<8x16xbf16>
    %94 = vector.extract_strided_slice %20 {offsets = [0, 24], sizes = [16, 8], strides = [1, 1]} : vector<16x32xbf16> to vector<16x8xbf16>
    %cst_46 = arith.constant dense<0.000000e+00> : vector<8x8xf32>
    %95 = tpu.matmul %93, %94, %cst_46 {dimension_numbers = #tpu.dot_dimension_numbers<[1], [0], [0], [1], [0, 0, 1, 1], [], []>} : vector<8x16xbf16>, vector<16x8xbf16>, vector<8x8xf32> -> vector<8x8xf32>
    %c0_47 = arith.constant 0 : index
    %c24 = arith.constant 24 : index
    %96 = vector.load %arg14[%c0_47, %c24] : memref<8x32xf32, #tpu.memory_space<vmem>>, vector<8x8xf32>
    tpu.vector_store %arg14[%c0_47, %c24], %95 {strides = array<i32>} : memref<8x32xf32, #tpu.memory_space<vmem>>, vector<8x8xf32>,
    %c0_48 = arith.constant 0 : index
    %c0_49 = arith.constant 0 : index
    %97 = vector.load %arg14[%c0_48, %c0_49] : memref<8x32xf32, #tpu.memory_space<vmem>>, vector<8x32xf32>
    %98 = arith.truncf %97 : vector<8x32xf32> to vector<8x32xbf16>
    %c0_50 = arith.constant 0 : index
    %c0_51 = arith.constant 0 : index
    %99 = vector.load %arg8[%c0_50, %c0_51] : memref<32x32xbf16, #tpu.memory_space<vmem>>, vector<32x32xbf16>
    %cst_52 = arith.constant dense<0.000000e+00> : vector<8x32xf32>
    %100 = tpu.matmul %98, %99, %cst_52 {dimension_numbers = #tpu.dot_dimension_numbers<[1], [0], [0], [1], [0, 0, 1, 1], [], []>} : vector<8x32xbf16>, vector<32x32xbf16>, vector<8x32xf32> -> vector<8x32xf32>
    %c0_53 = arith.constant 0 : index
    %c0_54 = arith.constant 0 : index
    %101 = vector.load %arg9[%c0_53, %c0_54] : memref<1x32xf32, #tpu.memory_space<vmem>>, vector<1x32xf32>
    %102 = vector.broadcast %101 : vector<1x32xf32> to vector<8x32xf32>
    %103 = arith.addf %100, %102 : vector<8x32xf32>
    %104 = arith.addf %1, %103 : vector<8x32xf32>
    %cst_55 = arith.constant dense<0.000000e+00> : vector<8xf32>
    %105 = vector.multi_reduction <add>, %104, %cst_55 [1] : vector<8x32xf32> to vector<8xf32>
    %106 = vector.shape_cast %105 : vector<8xf32> to vector<8x1xf32>
    %cst_56 = arith.constant 3.200000e+01 : f32
    %107 = vector.broadcast %cst_56 : f32 to vector<8x1xf32>
    %108 = arith.divf %106, %107 : vector<8x1xf32>
    %109 = vector.broadcast %108 : vector<8x1xf32> to vector<8x32xf32>
    %110 = arith.subf %104, %109 : vector<8x32xf32>
    %111 = arith.mulf %110, %110 : vector<8x32xf32>
    %cst_57 = arith.constant dense<0.000000e+00> : vector<8xf32>
    %112 = vector.multi_reduction <add>, %111, %cst_57 [1] : vector<8x32xf32> to vector<8xf32>
    %113 = vector.shape_cast %112 : vector<8xf32> to vector<8x1xf32>
    %cst_58 = arith.constant 3.200000e+01 : f32
    %114 = vector.broadcast %cst_58 : f32 to vector<8x1xf32>
    %115 = arith.divf %113, %114 : vector<8x1xf32>
    %cst_59 = arith.constant 9.99999974E-6 : f32
    %116 = vector.broadcast %cst_59 : f32 to vector<8x1xf32>
    %117 = arith.addf %115, %116 : vector<8x1xf32>
    %118 = math.rsqrt %117 : vector<8x1xf32>
    %119 = vector.broadcast %108 : vector<8x1xf32> to vector<8x32xf32>
    %120 = arith.subf %104, %119 : vector<8x32xf32>
    %121 = vector.broadcast %118 : vector<8x1xf32> to vector<8x32xf32>
    %122 = arith.mulf %120, %121 : vector<8x32xf32>
    %c0_60 = arith.constant 0 : index
    %c0_61 = arith.constant 0 : index
    %123 = vector.load %arg10[%c0_60, %c0_61] : memref<1x32xf32, #tpu.memory_space<vmem>>, vector<1x32xf32>
    %124 = vector.broadcast %123 : vector<1x32xf32> to vector<8x32xf32>
    %125 = arith.mulf %122, %124 : vector<8x32xf32>
    %c0_62 = arith.constant 0 : index
    %c0_63 = arith.constant 0 : index
    %126 = vector.load %arg11[%c0_62, %c0_63] : memref<1x32xf32, #tpu.memory_space<vmem>>, vector<1x32xf32>
    %127 = vector.broadcast %126 : vector<1x32xf32> to vector<8x32xf32>
    %128 = arith.addf %125, %127 : vector<8x32xf32>
    %c0_64 = arith.constant 0 : index
    %c0_65 = arith.constant 0 : index
    %c0_66 = arith.constant 0 : index
    %129 = vector.load %arg12[%c0_64, %c0_65, %c0_66] : memref<1x8x32xf32, #tpu.memory_space<vmem>>, vector<1x8x32xf32>
    %130 = vector.shape_cast %129 : vector<1x8x32xf32> to vector<8x32xf32>
    %131 = vector.shape_cast %128 : vector<8x32xf32> to vector<1x8x32xf32>
    tpu.vector_store %arg12[%c0_64, %c0_65, %c0_66], %131 {strides = array<i32>} : memref<1x8x32xf32, #tpu.memory_space<vmem>>, vector<1x8x32xf32>,
    return
  }
  func.func @transform_0(%arg0: i32, %arg1: i32) -> (i32, i32, i32) {
    %c0_i32 = arith.constant 0 : i32
    %c0_i32_0 = arith.constant 0 : i32
    return %arg0, %arg1, %c0_i32 : i32, i32, i32
  }
  func.func @transform_1(%arg0: i32, %arg1: i32) -> (i32, i32, i32) {
    %c0_i32 = arith.constant 0 : i32
    %c0_i32_0 = arith.constant 0 : i32
    %c0_i32_1 = arith.constant 0 : i32
    return %arg0, %c0_i32, %c0_i32_0 : i32, i32, i32
  }
  func.func @transform_2(%arg0: i32, %arg1: i32) -> (i32, i32) {
    %c0_i32 = arith.constant 0 : i32
    %c0_i32_0 = arith.constant 0 : i32
    %c0_i32_1 = arith.constant 0 : i32
    return %c0_i32, %c0_i32_0 : i32, i32
  }
  func.func @transform_3(%arg0: i32, %arg1: i32) -> (i32, i32) {
    %c0_i32 = arith.constant 0 : i32
    %c0_i32_0 = arith.constant 0 : i32
    %c0_i32_1 = arith.constant 0 : i32
    return %c0_i32, %c0_i32_0 : i32, i32
  }
  func.func @transform_4(%arg0: i32, %arg1: i32) -> (i32, i32) {
    %c0_i32 = arith.constant 0 : i32
    %c0_i32_0 = arith.constant 0 : i32
    %c0_i32_1 = arith.constant 0 : i32
    return %c0_i32, %c0_i32_0 : i32, i32
  }
  func.func @transform_5(%arg0: i32, %arg1: i32) -> (i32, i32) {
    %c0_i32 = arith.constant 0 : i32
    %c0_i32_0 = arith.constant 0 : i32
    %c0_i32_1 = arith.constant 0 : i32
    return %c0_i32, %c0_i32_0 : i32, i32
  }
  func.func @transform_6(%arg0: i32, %arg1: i32) -> (i32, i32) {
    %c0_i32 = arith.constant 0 : i32
    %c0_i32_0 = arith.constant 0 : i32
    %c0_i32_1 = arith.constant 0 : i32
    return %c0_i32, %c0_i32_0 : i32, i32
  }
  func.func @transform_7(%arg0: i32, %arg1: i32) -> (i32, i32) {
    %c0_i32 = arith.constant 0 : i32
    %c0_i32_0 = arith.constant 0 : i32
    %c0_i32_1 = arith.constant 0 : i32
    return %c0_i32, %c0_i32_0 : i32, i32
  }
  func.func @transform_8(%arg0: i32, %arg1: i32) -> (i32, i32) {
    %c0_i32 = arith.constant 0 : i32
    %c0_i32_0 = arith.constant 0 : i32
    %c0_i32_1 = arith.constant 0 : i32
    return %c0_i32, %c0_i32_0 : i32, i32
  }
  func.func @transform_9(%arg0: i32, %arg1: i32) -> (i32, i32) {
    %c0_i32 = arith.constant 0 : i32
    %c0_i32_0 = arith.constant 0 : i32
    %c0_i32_1 = arith.constant 0 : i32
    return %c0_i32, %c0_i32_0 : i32, i32
  }
  func.func @transform_10(%arg0: i32, %arg1: i32) -> (i32, i32, i32) {
    %c0_i32 = arith.constant 0 : i32
    %c0_i32_0 = arith.constant 0 : i32
    return %arg0, %arg1, %c0_i32 : i32, i32, i32
  }
  func.func @transform_11(%arg0: i32, %arg1: i32) -> (i32, i32, i32, i32) {
    %c0_i32 = arith.constant 0 : i32
    %c0_i32_0 = arith.constant 0 : i32
    %c0_i32_1 = arith.constant 0 : i32
    return %arg0, %c0_i32, %arg1, %c0_i32_0 : i32, i32, i32, i32
  }
}

</mosaic_0001>

<bundles_post_ra>
// kernel: decoder_layer.5
= control target key start
LH: loop header
LB: loop body
LE: loop exit
PB: predicated region body
PF: predicated region fallthrough
CT: control target
= control target key end

     0   :  { %v377_v1 = vmov 0.0   ;;  %vm378_vm0 = vmmov 0   ;;  %vm54_vm1 = vcmask 261120   ;;  %s489_s0 = inlined_call_operand.vmem [shape: f32[16,32], index: 0, kind: input, shape index: {}]   ;;  %s490_s1 = inlined_call_operand.vmem [shape: bf16[32,128], index: 1, kind: input, shape index: {}]   ;;  %s491_s2 = inlined_call_operand.vmem [shape: f32[1,128], index: 2, kind: input, shape index: {}]   ;;  %s492_s3 = inlined_call_operand.vmem [shape: bf16[128,32], index: 3, kind: input, shape index: {}]   ;;  %s493_s4 = inlined_call_operand.vmem [shape: f32[1,32], index: 4, kind: input, shape index: {}]   ;;  %s494_s5 = inlined_call_operand.vmem [shape: f32[1,32], index: 5, kind: input, shape index: {}]   ;;  %s495_s6 = inlined_call_operand.vmem [shape: f32[1,32], index: 6, kind: input, shape index: {}]   ;;  %s496_s7 = inlined_call_operand.hbm [shape: f32[16,32], index: 7, kind: output, shape index: {}]  }
   0x1   :  { %v339_v0 = vld [vmem:[%s490_s1] sm:$0xff]   ;;  %306 = vmatprep.subr.bf16.mxu0 %v377_v1  ;;  %v340_v2 = vld [vmem:[%s490_s1 + $0x8] sm:$0xff]   ;;  %314 = vmatprep.subr.bf16.mxu1 %v377_v1  ;;  %v343_v8 = vld [vmem:[%s492_s3 + $0x10] sm:$0xff]  }
   0x2   :  { %307 = vmatpush3.bf16.msra.mxu0 %v339_v0  ;;  %310 = vmatprep.mubr.msk.bf16.mxu0 %vm378_vm0, %v377_v1  ;;  %v28_v3 = vld [vmem:[%s489_s0] sm:$0xff]  ;;  %v29_v4 = vld [vmem:[%s489_s0 + $0x8] sm:$0xff] }
   0x3   :  { %308 = vmatprep.subr.bf16.mxu0 %v377_v1  ;;  %v341_v5 = vld [vmem:[%s492_s3] sm:$0xff]   ;;  %330 = vmatprep.mubr.msk.bf16.mxu1 %vm378_vm0, %v377_v1  ;;  %v30_v6 = vpack.c.bf16 %v29_v4, %v28_v3  ;;  %v342_v7 = vld [vmem:[%s492_s3 + $0x8] sm:$0xff]  }
   0x4   :  { %315 = vmatpush3.bf16.msra.mxu1 %v341_v5 }
   0x5   :  { %316 = vmatprep.subr.bf16.mxu1 %v377_v1 }
   0x6   :  { %309 = vmatpush3.bf16.msra.mxu0 %v340_v2 }
   0x8   :  { %317 = vmatpush3.bf16.msra.mxu1 %v342_v7 }
   0x9   :  { %311 = vmatmul.mubr.msk.bf16.vlgmr.msra.gmra.mrb[0].mxu0 %vm54_vm1, %v30_v6  ;;  %318 = vmatprep.subr.bf16.mxu1 %v377_v1 }
   0xa   :  { %12 = vsyncpa [#allocation3], 0  ;;  %v344_v9 = vld [vmem:[%s492_s3 + $0x18] sm:$0xff]   ;;  %v345_v10 = vld [vmem:[%s492_s3 + $0x20] sm:$0xff]   ;;  %s379_s28 = smov [#allocation2]  }
   0xb   :  { %v346_v11 = vld [vmem:[%s492_s3 + $0x28] sm:$0xff]   ;;  %v347_v12 = vld [vmem:[%s492_s3 + $0x30] sm:$0xff]   ;;  %v348_v13 = vld [vmem:[%s492_s3 + $0x38] sm:$0xff]   ;;  %s268_s29 = sshll.u32 %s379_s28, 4  ;;  %s269_s29 = int_to_ptr.vmem [resolvable:$true] %s268_s29 }
   0xc   :  { %319 = vmatpush3.bf16.msra.mxu1 %v343_v8  ;;  %v279_v14 = vld [vmem:[%s491_s2] ss:$0 sm:$0xff]  ;;  %s353_s30 = scalar_lea.vmem %s269_s29, 256  ;;  %p358_p1 = scmp.lt.s32.totalorder %s269_s29, %s269_s29 }
   0xd   :  { %320 = vmatprep.subr.bf16.mxu1 %v377_v1  ;;  %v283_v24 = vld [vmem:[%s493_s4] ss:$0 sm:$0xff]  ;;  %p354_p0 = scmp.ne.s32.totalorder %s269_s29, %s353_s30  ;;  %p359_p2 = scmp.lt.s32.totalorder %s353_s30, %s353_s30 }
   0xe   :  { %v292_v52 = vld [vmem:[%s494_s5] ss:$0 sm:$0xff] }
   0xf   :  { %v293_v54 = vld [vmem:[%s495_s6] ss:$0 sm:$0xff]  ;;  %p360_p3 = por %p359_p2, %p358_p1 }
  0x10   :  { %321 = vmatpush3.bf16.msra.mxu1 %v344_v9 }
  0x11   :  { %322 = vmatprep.subr.bf16.mxu1 %v377_v1  ;;  %p361_p4 = pnand %p360_p3, %p354_p0 }
  0x14   :  { %323 = vmatpush3.bf16.msra.mxu1 %v345_v10 }
  0x15   :  { %324 = vmatprep.subr.bf16.mxu1 %v377_v1 }
  0x18   :  { %325 = vmatpush3.bf16.msra.mxu1 %v346_v11 }
  0x19   :  { %326 = vmatprep.subr.bf16.mxu1 %v377_v1 }
  0x1c   :  { %327 = vmatpush3.bf16.msra.mxu1 %v347_v12 }
  0x1d   :  { %328 = vmatprep.subr.bf16.mxu1 %v377_v1 }
  0x20   :  { %329 = vmatpush3.bf16.msra.mxu1 %v348_v13 }
  0xdc   :  { %v92_v15 = vpop.f32.mrb[0].mxu0 }
  0xdd   :  { %v93_v16 = vadd.f32 %v279_v14, %v92_v15  ;;  %v312_v17 = vpop.f32.mrb[1].mxu0 }
  0xde   :  { %v95_v18 = vpop.f32.mrb[2].mxu0 }
  0xdf   :  { %v96_v19 = vadd.f32 %v279_v14, %v95_v18  ;;  %v313_v20 = vpop.f32.mrb[3].mxu0  ;;  %v99_v21 = vmax.f32 %v93_v16, 0.0 }
  0xe1   :  { %v100_v22 = vmax.f32 %v96_v19, 0.0 }
  0xe3   :  { %v101_v23 = vpack.c.bf16 %v100_v22, %v99_v21 }
  0xe5   :  { %331 = vmatmul.mubr.bf16.vlgmr.msra.gmra.mrb[0].mxu1 %v101_v23 }
 0x1b8   :  { %v207_v25 = vpop.f32.mrb[0].mxu1 }
 0x1b9   :  { %v208_v26 = vadd.f32 %v283_v24, %v207_v25  ;;  %v332_v27 = vpop.f32.mrb[1].mxu1 }
 0x1ba   :  { %v210_v28 = vpop.f32.mrb[2].mxu1 }
 0x1bb   :  { %v211_v29 = vadd.f32 %v283_v24, %v210_v28  ;;  %v333_v30 = vpop.f32.mrb[3].mxu1  ;;  %v214_v31 = vadd.f32 %v208_v26, %v28_v3 }
 0x1bd   :  { %v216_v32 = vsel %vm54_vm1, %v214_v31, 0.0  ;;  %v215_v33 = vadd.f32 %v211_v29, %v29_v4 }
 0x1be   :  { %217 = vadd.xlane.f32.xlu0 %v216_v32 }
 0x1bf   :  { %v219_v34 = vsel %vm54_vm1, %v215_v33, 0.0 }
 0x1c2   :  { %220 = vadd.xlane.f32.xlu0 %v219_v34 }
 0x24b   :  { %v218_v35 = vpop.xlane.xlu0 %217 }
 0x24c   :  { %v223_v36 = vmul.f32 0.03125, %v218_v35 }
 0x24e   :  { %v225_v37 = vsub.f32 %v214_v31, %v223_v36 }
 0x24f   :  { %v221_v38 = vpop.xlane.xlu0 %220 }
 0x250   :  { %v224_v39 = vmul.f32 0.03125, %v221_v38  ;;  %v227_v40 = vmul.f32 %v225_v37, %v225_v37 }
 0x252   :  { %v226_v41 = vsub.f32 %v215_v33, %v224_v39  ;;  %v229_v42 = vsel %vm54_vm1, %v227_v40, 0.0 }
 0x253   :  { %230 = vadd.xlane.f32.xlu1 %v229_v42 }
 0x254   :  { %v228_v43 = vmul.f32 %v226_v41, %v226_v41 }
 0x256   :  { %v232_v44 = vsel %vm54_vm1, %v228_v43, 0.0 }
 0x257   :  { %233 = vadd.xlane.f32.xlu1 %v232_v44 }
 0x2e0   :  { %v231_v45 = vpop.xlane.xlu1 %230 }
 0x2e1   :  { %v235_v46 = vmul.f32 0.03125, %v231_v45 }
 0x2e3   :  { %v237_v47 = vadd.f32 1e-05, %v235_v46 }
 0x2e4   :  { %v234_v48 = vpop.xlane.xlu1 %233 }
 0x2e5   :  { %349 = vrsqrt.f32 %v237_v47  ;;  %v236_v49 = vmul.f32 0.03125, %v234_v48 }
 0x2e7   :  { %v238_v50 = vadd.f32 1e-05, %v236_v49 }
 0x2e9   :  { %351 = vrsqrt.f32 %v238_v50 }
 0x2ef   :  { %v350_v51 = vpop.eup %349 }
 0x2f0   :  { %v241_v53 = vmul.f32 %v350_v51, %v225_v37 }
 0x2f2   :  { %v250_v55 = vmul.f32 %v292_v52, %v241_v53 }
 0x2f3   :  { %v352_v56 = vpop.eup %351 }
 0x2f4   :  { %v242_v57 = vmul.f32 %v352_v56, %v226_v41  ;;  %v259_v58 = vadd.f32 %v293_v54, %v250_v55 }
 0x2f6   :  { %v251_v59 = vmul.f32 %v292_v52, %v242_v57  ;;  %261 = vst.msk [vmem:[#allocation2] sm:$0xff] %vm54_vm1, %v259_v58 }
 0x2f8   :  { %v260_v60 = vadd.f32 %v293_v54, %v251_v59 }
 0x2fa   :  { %262 = vst.msk [vmem:[#allocation2 + $0x8] sm:$0xff] %vm54_vm1, %v260_v60 }
 0x2fb   :  { %364 = shalt.err (!%p361_p4)
}
 0x2fc   :  { %s365_s8 = scalar_lea.hbm %s496_s7, 256 }
 0x2fd   :  { %p366_p5 = scmp.ne.s32.totalorder %s496_s7, %s365_s8  ;;  %p369_p6 = scmp.lt.u32.totalorder %s365_s8, %s496_s7 }
 0x2ff   :  { %p371_p7 = pnand %p369_p6, %p366_p5 }
 0x301   :  { %374 = shalt.err (!%p371_p7)
}
 0x302   :  { %s380_s12 = smov 128   ;;  %s381_s13 = smov 8  }
 0x303   :  { %274 = dma.vmem_to_hbm [thread:$0]  %s269_s29, 256, %s496_s7, [#allocation3], %s380_s12, %s380_s12, %s381_s13  }
 0x304   :  { %375 = dma.done.wait [#allocation3], 256  }
 0x305   :  { %376 = vsyncadd [#allocation3], 4294967040 }
 0x306   :  { %278 = vsyncpa [#allocation3], 1 }

// kernel: decoder_layer.3
= control target key start
LH: loop header
LB: loop body
LE: loop exit
PB: predicated region body
PF: predicated region fallthrough
CT: control target
= control target key end

     0   :  { %s1933_s0 = inlined_call_operand.vmem [shape: f32[2,8,32], index: 0, kind: input, shape index: {}, may-alias: {0,1}]   ;;  %s1934_s1 = inlined_call_operand.vmem [shape: f32[2,8,32], index: 1, kind: input, shape index: {}, may-alias: {0,1}]   ;;  %s1935_s2 = inlined_call_operand.vmem [shape: bf16[32,32], index: 2, kind: input, shape index: {}]   ;;  %s1936_s3 = inlined_call_operand.vmem [shape: f32[1,32], index: 3, kind: input, shape index: {}]   ;;  %s1937_s4 = inlined_call_operand.vmem [shape: bf16[32,64], index: 4, kind: input, shape index: {}]   ;;  %s1938_s5 = inlined_call_operand.vmem [shape: f32[1,64], index: 5, kind: input, shape index: {}]   ;;  %s1939_s6 = inlined_call_operand.vmem [shape: bf16[32,32], index: 6, kind: input, shape index: {}]   ;;  %s1940_s7 = inlined_call_operand.vmem [shape: f32[1,32], index: 7, kind: input, shape index: {}]   ;;  %s1941_s8 = inlined_call_operand.vmem [shape: f32[1,32], index: 8, kind: input, shape index: {}]   ;;  %s1942_s9 = inlined_call_operand.vmem [shape: f32[1,32], index: 9, kind: input, shape index: {}]   ;;  %s1943_s10 = inlined_call_operand.vmem [shape: f32[2,8,32], index: 10, kind: output, shape index: {0}]   ;;  %s1944_s11 = inlined_call_operand.hbm [shape: f32[2,4,8,8], index: 11, kind: output, shape index: {1}]  }
   0x1   :  { %1946 = sst [smem:[#allocation6_spill]] %s1933_s0 }
   0x2   :  { %1947 = sst [smem:[#allocation7_spill]] %s1934_s1 }
   0x3   :  { %17 = vsyncpa [#allocation4], 0 }
   0x4   :  { %19 = vsyncpa [#allocation4 + $0x1], 0  ;;  %s1675_s17 = smov 0   ;;  %s1677_s18 = smov 0  }
   0x5   :  { %s1679_s19 = smov 0   ;;  %s1681_s20 = smov 0  }
   0x6   :  { %s1683_s21 = smov 0   ;;  %s1685_s22 = smov 0  }
   0x7 LB: > { %s1292_s23 = sadd.s32 4294967295, %s1599_s22   ;;  %s1293_s24 = sadd.s32 4294967294, %s1599_s22   ;;  %s1599_s22 = sphi %s1685_s22, %s25_s22   ;;  %s1595_s21 = sphi %s1683_s21, %s1957_s21   ;;  %s1591_s20 = sphi %s1681_s20, %s1956_s20   ;;  %s1587_s19 = sphi %s1679_s19, %s1955_s19   ;;  %s1583_s18 = sphi %s1677_s18, %s1954_s18   ;;  %s1579_s17 = sphi %s1675_s17, %s1953_s17  }
   0x8   : > { %s37_s25 = sadd.s32 1, %s1595_s21  ;;  %s296_s26 = sadd.s32 1, %s1587_s19 }
   0x9   : > { %p39_p0 = scmp.ge.s32.totalorder %s37_s25, 2  ;;  %p306_p1 = scmp.ne.s32.totalorder %s1587_s19, %s1583_s18 }
   0xa   : > { %p307_p2 = scmp.eq.s32.totalorder %s1292_s23, 1  ;;  %p312_p3 = scmp.ne.s32.totalorder %s1583_s18, %s1579_s17 }
   0xb   : > { %s1959_s25 = smov (%p39_p0, %s37_s25), 0  ;;  %p313_p5 = scmp.eq.s32.totalorder %s1293_s24, 1 }
   0xc   : > { %p1715_p4 = por %p307_p2, %p306_p1  ;;  %s291_s28 = ssub.s32 %s1595_s21, %s1959_s25 }
   0xd   : > { %p1296_p6 = scmp.ge.s32.totalorder %s1599_s22, 1  ;;  %p294_p7 = scmp.eq.s32.totalorder %s291_s28, 0 }
   0xe   : > { %p1722_p8 = por %p313_p5, %p312_p3  ;;  %p372_p9 = scmp.lt.s32.totalorder %s1599_s22, 3 }
   0xf   : > { %s1728_s30 = scalar_select %p294_p7, %s1587_s19, %s296_s26  }
  0x10   : > { %p373_p10 = pnand %p1296_p6, %p372_p9 }
  0x11   : > { %v1497_v0 = vld [vmem:[%s1937_s4] sm:$0xff] (!%p373_p10)   ;;  %v1601_v1 = vmov (!%p373_p10), 0.0   ;;  %v1499_v3 = vld [vmem:[%s1937_s4 + $0x8] sm:$0xff] (!%p373_p10)   ;;  %vm1602_vm0 = vmmov (!%p373_p10), 0   ;;  %p425_p11 = scmp.lt.s32.totalorder (!%p373_p10), %s1591_s20, 1  ;;  %s1950_s1 = sld [smem:[#allocation7_spill]] (!%p373_p10) }
  0x12   : > { %376 = sbr.rel (%p373_p10) target bundleno = 1791 (0x6ff), region = 60  ;;  %1365 = vmatprep.subr.bf16.mxu1 (!%p373_p10), %v1601_v1  ;;  %1357 = vmatprep.subr.bf16.mxu0 (!%p373_p10), %v1601_v1  ;;  %v1498_v2 = vld [vmem:[%s1935_s2] sm:$0xff] (!%p373_p10)   ;;  %v1500_v4 = vld [vmem:[%s1935_s2 + $0x8] sm:$0xff] (!%p373_p10)   ;;  %vm470_vm1 = vcmask (!%p373_p10), 261120   ;;  %s1951_s0 = sld [smem:[#allocation6_spill]] (!%p373_p10)  ;;  %vm583_vm2 = vcmask (!%p373_p10), 64512  }
  0x13   : > { %1366 = vmatpush3.bf16.msra.mxu1 (!%p373_p10), %v1497_v0  ;;  %1369 = vmatprep.mubr.msk.bf16.mxu1 (!%p373_p10), %vm1602_vm0, %v1601_v1  ;;  %v1305_v9 = vld [vmem:[%s1938_s5] ss:$0 sm:$0xff] (!%p373_p10)  ;;  %s1604_s16 = smov (!%p373_p10), 120   ;;  %s1605_s23 = smov (!%p373_p10), 104   ;;  %vm649_vm3 = vcmask (!%p373_p10), 1043456   ;;  %vm811_vm4 = vcmask (!%p373_p10), 130112  }
  0x14   : > { %1367 = vmatprep.subr.bf16.mxu1 (!%p373_p10), %v1601_v1  ;;  %1358 = vmatpush3.bf16.msra.mxu0 (!%p373_p10), %v1498_v2  ;;  %v1301_v10 = vld [vmem:[%s1936_s3] ss:$0 sm:$0xff] (!%p373_p10)  ;;  %s1607_s26 = smov (!%p373_p10), 80   ;;  %s422_s13 = sand.u32 (!%p373_p10), 1, %s1583_s18   ;;  %vm929_vm5 = vcmask (!%p373_p10), 195712   ;;  %vm1047_vm6 = vcmask (!%p373_p10), 261312  }
  0x15   : > { %1359 = vmatprep.subr.bf16.mxu0 (!%p373_p10), %v1601_v1  ;;  %1361 = vmatprep.mubr.msk.bf16.mxu0 (!%p373_p10), %vm1602_vm0, %v1601_v1  ;;  %s1297_s14 = sshll.u32 (!%p373_p10), %s422_s13, 5 }
  0x17   : > { %1368 = vmatpush3.bf16.msra.mxu1 (!%p373_p10), %v1499_v3 }
  0x18   : > { %1360 = vmatpush3.bf16.msra.mxu0 (!%p373_p10), %v1500_v4  ;;  %1379 = vmatprep.subr.bf16.mxu1 (!%p373_p10), %v1601_v1 }
  0x19   : > { %s426_s28 = scalar_select %p425_p11, %s1591_s20, 1  ;;  %1373 = vmatprep.subr.bf16.mxu0 %v1601_v1 }
  0x1b   : > { %s1752_s12 = sshll.u32 %s426_s28, 3  ;;  %s1608_s28 = smov 72  }
  0x1c   : > { %s435_s15 = scalar_lea.vmem %s1950_s1, %s1752_s12  ;;  %s431_s24 = scalar_lea.vmem %s1951_s0, %s1752_s12 }
  0x1d   : > { %v445_v5 = vld [vmem:[%s435_s15] sm:$0xff]  ;;  %s1603_s15 = smov 112  }
  0x1e   : > { %v514_v6 = vpack.c.bf16 %v445_v5, %v445_v5  ;;  %v1764_v7 = vld [vmem:[%s431_s24] sm:$0xff]  ;;  %s1606_s24 = smov 96  }
  0x1f   : > { %v446_v8 = vpack.c.bf16 %v1764_v7, %v1764_v7 }
  0x20   : > { %1370 = vmatmul.mubr.msk.bf16.vlgmr.msra.gmra.mrb[0].mxu1 %vm470_vm1, %v514_v6 }
  0x21   : > { %1362 = vmatmul.mubr.msk.bf16.vlgmr.msra.gmra.mrb[0].mxu0 %vm470_vm1, %v446_v8  ;;  %1381 = vmatprep.mubr.msk.bf16.mxu1 %vm1602_vm0, %v1601_v1 }
  0x22   : > { %1375 = vmatprep.mubr.msk.bf16.mxu0 %vm1602_vm0, %v1601_v1 }
  0xf3   : > { %v575_v11 = vpop.f32.mrb[0].mxu1 }
  0xf4   : > { %v576_v12 = vadd.f32 %v1305_v9, %v575_v11  ;;  %v1371_v13 = vpop.f32.mrb[1].mxu1  ;;  %v508_v14 = vpop.f32.mrb[0].mxu0 }
  0xf5   : > { %v578_v15 = vpop.f32.mrb[2].mxu1  ;;  %v509_v16 = vadd.f32 %v1301_v10, %v508_v14  ;;  %v1363_v17 = vpop.f32.mrb[1].mxu0 }
  0xf6   : > { %v1780_v18 = vpack.c.bf16 %v576_v12, %v576_v12  ;;  %v1372_v19 = vpop.f32.mrb[3].mxu1  ;;  %v511_v20 = vpop.f32.mrb[2].mxu0 }
  0xf7   : > { %v1364_v21 = vpop.f32.mrb[3].mxu0  ;;  %v581_v22 = vpack.c.bf16 %v509_v16, %v509_v16 }
  0xf8   : > { %815 = vrot.lane.b32.xlu1 %v1780_v18, %s1603_s15  ;;  %697 = vrot.lane.b32.xlu0 %v1780_v18, %s1604_s16  ;;  %v588_v23 = vsel %vm583_vm2, %v1780_v18, 0 }
  0xf9   : > { %1374 = vmatpush3.bf16.xpose.msra.mxu0 %v588_v23 }
  0xfa   : > { %1385 = vmatprep.subr.bf16.mxu0 %v1601_v1 }
  0xfc   : > { %813 = vrot.lane.b32.xlu1 %v581_v22, %s1603_s15  ;;  %695 = vrot.lane.b32.xlu0 %v581_v22, %s1604_s16  ;;  %s1609_s15 = smov 88   ;;  %s1823_s16 = scalar_lea.vmem [#allocation3], %s1297_s14 }
 0x100   : > { %931 = vrot.lane.b32.xlu1 %v581_v22, %s1605_s23  ;;  %933 = vrot.lane.b32.xlu0 %v1780_v18, %s1605_s23  ;;  %s1945_s23 = smov 8  }
 0x101   : > { %1376 = vmatmul.mubr.msk.bf16.vlgmr.msra.gmra.mrb[4].mxu0 %vm583_vm2, %v581_v22 }
 0x102   : > { %1387 = vmatprep.mubr.msk.bf16.mxu0 %vm1602_vm0, %v1601_v1 }
 0x16a   : > { %v698_v24 = vpop.permute.xlu0 %697  ;;  %v816_v26 = vpop.permute.xlu1 %815 }
 0x16b   : > { %v703_v25 = vsel %vm583_vm2, %v698_v24, 0  ;;  %v821_v28 = vsel %vm583_vm2, %v816_v26, 0 }
 0x16c   : > { %1386 = vmatpush3.bf16.xpose.msra.mxu0 %v703_v25 }
 0x16d   : > { %1397 = vmatprep.subr.bf16.mxu0 %v1601_v1 }
 0x16e   : > { %v696_v27 = vpop.permute.xlu0 %695  ;;  %v814_v30 = vpop.permute.xlu1 %813 }
 0x172   : > { %v934_v29 = vpop.permute.xlu0 %933  ;;  %v932_v32 = vpop.permute.xlu1 %931 }
 0x173   : > { %1388 = vmatmul.mubr.msk.bf16.vlgmr.msra.gmra.mrb[8].mxu0 %vm583_vm2, %v696_v27  ;;  %v939_v31 = vsel %vm583_vm2, %v934_v29, 0 }
 0x174   : > { %1398 = vmatpush3.bf16.xpose.msra.mxu0 %v821_v28  ;;  %1399 = vmatprep.mubr.msk.bf16.mxu0 %vm1602_vm0, %v1601_v1 }
 0x175   : > { %1409 = vmatprep.subr.bf16.mxu0 %v1601_v1 }
 0x17b   : > { %1400 = vmatmul.mubr.msk.bf16.vlgmr.msra.gmra.mrb[12].mxu0 %vm583_vm2, %v814_v30 }
 0x17c   : > { %1410 = vmatpush3.bf16.xpose.msra.mxu0 %v939_v31  ;;  %1411 = vmatprep.mubr.msk.bf16.mxu0 %vm1602_vm0, %v1601_v1 }
 0x17d   : > { %1421 = vmatprep.subr.bf16.mxu0 %v1601_v1 }
 0x183   : > { %1412 = vmatmul.mubr.msk.bf16.vlgmr.msra.gmra.mrb[16].mxu0 %vm583_vm2, %v932_v32 }
 0x184   : > { %1425 = vmatprep.mubr.msk.bf16.mxu0 %vm1602_vm0, %v1601_v1 }
 0x1d4   : > { %v624_v33 = vpop.f32.mrb[4].mxu0 }
 0x1d5   : > { %v1377_v34 = vpop.f32.mrb[5].mxu0  ;;  %v630_v35 = vsel %vm583_vm2, %v624_v33, -inf }
 0x1d6   : > { %631 = vmax.xlane.f32.xlu0 %v630_v35  ;;  %v627_v36 = vpop.f32.mrb[6].mxu0 }
 0x1d7   : > { %v1378_v37 = vpop.f32.mrb[7].mxu0 }
 0x246   : > { %v739_v38 = vpop.f32.mrb[8].mxu0 }
 0x247   : > { %v1389_v39 = vpop.f32.mrb[9].mxu0  ;;  %v745_v40 = vsel %vm583_vm2, %v739_v38, -inf }
 0x248   : > { %746 = vmax.xlane.f32.xlu1 %v745_v40  ;;  %v742_v41 = vpop.f32.mrb[10].mxu0 }
 0x249   : > { %v1390_v42 = vpop.f32.mrb[11].mxu0 }
 0x24e   : > { %v857_v43 = vpop.f32.mrb[12].mxu0 }
 0x24f   : > { %v1401_v44 = vpop.f32.mrb[13].mxu0  ;;  %v863_v45 = vsel %vm583_vm2, %v857_v43, -inf }
 0x250   : > { %864 = vmax.xlane.f32.xlu0 %v863_v45  ;;  %v860_v46 = vpop.f32.mrb[14].mxu0  ;;  %v1502_v44 = vld [vmem:[%s1939_s6 + $0x8] sm:$0xff]  }
 0x251   : > { %v1402_v47 = vpop.f32.mrb[15].mxu0 }
 0x256   : > { %v975_v48 = vpop.f32.mrb[16].mxu0 }
 0x257   : > { %v1413_v49 = vpop.f32.mrb[17].mxu0  ;;  %v981_v50 = vsel %vm583_vm2, %v975_v48, -inf }
 0x258   : > { %982 = vmax.xlane.f32.xlu0 %v981_v50  ;;  %v978_v51 = vpop.f32.mrb[18].mxu0 }
 0x259   : > { %v1414_v52 = vpop.f32.mrb[19].mxu0 }
 0x263   : > { %v632_v53 = vpop.xlane.xlu0 %631 }
 0x264   : > { %v633_v54 = vsub.f32 %v624_v33, %v632_v53 }
 0x266   : > { %v634_v55 = vmul.f32 1.442695, %v633_v54 }
 0x268   : > { %1503 = vpow2.f32 %v634_v55 }
 0x272   : > { %v1504_v56 = vpop.eup %1503 }
 0x273   : > { %v636_v57 = vsel %vm583_vm2, %v1504_v56, 0.0 }
 0x274   : > { %637 = vadd.xlane.f32.xlu1 %v636_v57  ;;  %v1320_v57 = vld [vmem:[%s1940_s7] ss:$0 sm:$0xff] }
 0x285   : > { %644 = vrot.lane.b32.xlu1 %v1780_v18, %s1606_s24 }
 0x2d5   : > { %v747_v58 = vpop.xlane.xlu1 %746 }
 0x2d6   : > { %v748_v59 = vsub.f32 %v739_v38, %v747_v58 }
 0x2d8   : > { %v749_v60 = vmul.f32 1.442695, %v748_v59 }
 0x2da   : > { %1505 = vpow2.f32 %v749_v60 }
 0x2dd   : > { %v865_v61 = vpop.xlane.xlu0 %864 }
 0x2de   : > { %v866_v62 = vsub.f32 %v857_v43, %v865_v61  ;;  %v1501_v43 = vld [vmem:[%s1939_s6] sm:$0xff]  }
 0x2df   : > { %1422 = vmatpush3.bf16.msra.mxu0 %v1501_v43 }
 0x2e0   : > { %v867_v63 = vmul.f32 1.442695, %v866_v62  ;;  %1423 = vmatprep.subr.bf16.mxu0 %v1601_v1 }
 0x2e2   : > { %1507 = vpow2.f32 %v867_v63 }
 0x2e3   : > { %1424 = vmatpush3.bf16.msra.mxu0 %v1502_v44 }
 0x2e4   : > { %v1506_v0 = vpop.eup %1505 }
 0x2e5   : > { %v983_v2 = vpop.xlane.xlu0 %982  ;;  %v751_v3 = vsel %vm583_vm2, %v1506_v0, 0.0 }
 0x2e6   : > { %v984_v4 = vsub.f32 %v975_v48, %v983_v2  ;;  %752 = vadd.xlane.f32.xlu0 %v751_v3 }
 0x2e8   : > { %v985_v5 = vmul.f32 1.442695, %v984_v4 }
 0x2ea   : > { %1509 = vpow2.f32 %v985_v5 }
 0x2ec   : > { %v1508_v6 = vpop.eup %1507 }
 0x2ed   : > { %v869_v8 = vsel %vm583_vm2, %v1508_v6, 0.0 }
 0x2ee   : > { %870 = vadd.xlane.f32.xlu1 %v869_v8 }
 0x2f4   : > { %v1510_v9 = vpop.eup %1509 }
 0x2f5   : > { %v987_v10 = vsel %vm583_vm2, %v1510_v9, 0.0 }
 0x2f6   : > { %988 = vadd.xlane.f32.xlu0 %v987_v10 }
 0x2ff   : > { %877 = vrot.lane.b32.xlu1 %v1780_v18, %s1607_s26  ;;  %s1875_s26 = scalar_lea.sflag [#allocation4], %s422_s13 }
 0x301   : > { %v638_v11 = vpop.xlane.xlu1 %637 }
 0x302   : > { %1511 = vrcp.f32 %v638_v11 }
 0x303   : > { %995 = vrot.lane.b32.xlu1 %v1780_v18, %s1608_s28  ;;  %s1174_s28 = sshll.u32 %s1823_s16, 4  ;;  %s1871_s28 = int_to_ptr.vmem [resolvable:$true] %s1174_s28 }
 0x304   : > { %s1521_s0 = scalar_lea.vmem %s1871_s28, 512 }
 0x305   : > { %v645_v12 = vpop.permute.xlu1 %644  ;;  %p1522_p12 = scmp.ne.s32.totalorder %s1871_s28, %s1521_s0 }
 0x306   : > { %v651_v13 = vsel %vm649_vm3, %v645_v12, 0 }
 0x307   : > { %1380 = vmatpush3.bf16.msra.mxu1 %v651_v13  ;;  %p1523_p13 = pnand %p1522_p12, %p1715_p4 }
 0x308   : > { %1391 = vmatprep.subr.bf16.mxu1 %v1601_v1 }
 0x309   : > { %p1524_p0 = pneg %p1523_p13 }
 0x30c   : > { %v1512_v14 = vpop.eup %1511  ;;  %759 = vrot.lane.b32.xlu0 %v1780_v18, %s1609_s15  ;;  %s1611_s15 = smov 16  }
 0x30d   : > { %v640_v15 = vmul.f32 %v1512_v14, %v1504_v56 }
 0x30f   : > { %641 = vst.msk [vmem:[%s1823_s16] sm:$0xff] %vm583_vm2, %v640_v15  ;;  %v642_v16 = vpack.c.bf16 %v640_v15, %v640_v15 }
 0x311   : > { %1382 = vmatmul.mubr.msk.bf16.vlgmr.msra.gmra.mrb[4].mxu1 %vm583_vm2, %v642_v16 }
 0x312   : > { %1393 = vmatprep.mubr.msk.bf16.mxu1 %vm1602_vm0, %v1601_v1 }
 0x373   : > { %v753_v17 = vpop.xlane.xlu0 %752 }
 0x374   : > { %1513 = vrcp.f32 %v753_v17 }
 0x37b   : > { %v871_v19 = vpop.xlane.xlu1 %870 }
 0x37c   : > { %1515 = vrcp.f32 %v871_v19 }
 0x37e   : > { %v1514_v20 = vpop.eup %1513 }
 0x37f   : > { %v755_v18 = vmul.f32 %v1514_v20, %v1506_v0  ;;  %v878_v26 = vpop.permute.xlu1 %877 }
 0x380   : > { %v883_v28 = vsel %vm649_vm3, %v878_v26, 0 }
 0x381   : > { %1312 = vst.msk [vmem:[%s1823_s16 + $0x8] sm:$0xff] %vm583_vm2, %v755_v18  ;;  %v758_v27 = vpack.c.bf16 %v755_v18, %v755_v18 }
 0x383   : > { %v989_v21 = vpop.xlane.xlu0 %988  ;;  %v996_v31 = vpop.permute.xlu1 %995 }
 0x384   : > { %1517 = vrcp.f32 %v989_v21  ;;  %v1001_v33 = vsel %vm649_vm3, %v996_v31, 0 }
 0x386   : > { %v1516_v22 = vpop.eup %1515 }
 0x387   : > { %v873_v23 = vmul.f32 %v1516_v22, %v1508_v6  ;;  %v760_v24 = vpop.permute.xlu0 %759 }
 0x388   : > { %v765_v25 = vsel %vm649_vm3, %v760_v24, 0 }
 0x389   : > { %1315 = vst.msk [vmem:[%s1823_s16 + $0x10] sm:$0xff] %vm583_vm2, %v873_v23  ;;  %1392 = vmatpush3.bf16.msra.mxu1 %v765_v25  ;;  %v876_v32 = vpack.c.bf16 %v873_v23, %v873_v23 }
 0x38a   : > { %1403 = vmatprep.subr.bf16.mxu1 %v1601_v1 }
 0x38c   : > { %1394 = vmatmul.mubr.msk.bf16.vlgmr.msra.gmra.mrb[8].mxu1 %vm583_vm2, %v758_v27 }
 0x38d   : > { %1404 = vmatpush3.bf16.msra.mxu1 %v883_v28  ;;  %1405 = vmatprep.mubr.msk.bf16.mxu1 %vm1602_vm0, %v1601_v1 }
 0x38e   : > { %v1518_v29 = vpop.eup %1517  ;;  %1415 = vmatprep.subr.bf16.mxu1 %v1601_v1 }
 0x38f   : > { %v991_v30 = vmul.f32 %v1518_v29, %v1510_v9 }
 0x391   : > { %1318 = vst.msk [vmem:[%s1823_s16 + $0x18] sm:$0xff] %vm583_vm2, %v991_v30  ;;  %v994_v34 = vpack.c.bf16 %v991_v30, %v991_v30 }
 0x394   : > { %1406 = vmatmul.mubr.msk.bf16.vlgmr.msra.gmra.mrb[12].mxu1 %vm583_vm2, %v876_v32 }
 0x395   : > { %1416 = vmatpush3.bf16.msra.mxu1 %v1001_v33  ;;  %1417 = vmatprep.mubr.msk.bf16.mxu1 %vm1602_vm0, %v1601_v1 }
 0x39c   : > { %1418 = vmatmul.mubr.msk.bf16.vlgmr.msra.gmra.mrb[16].mxu1 %vm583_vm2, %v994_v34 }
 0x3e4   : > { %v687_v35 = vpop.f32.mrb[4].mxu1 }
 0x3e5   : > { %693 = vst.msk [vmem:[#allocation2] sm:$0xff] %vm583_vm2, %v687_v35  ;;  %v1383_v36 = vpop.f32.mrb[5].mxu1 }
 0x3e6   : > { %v690_v37 = vpop.f32.mrb[6].mxu1 }
 0x3e7   : > { %v1384_v38 = vpop.f32.mrb[7].mxu1 }
 0x45f   : > { %v801_v39 = vpop.f32.mrb[8].mxu1 }
 0x460   : > { %808 = vrot.lane.b32.xlu0 %v801_v39, %s1945_s23  ;;  %v1395_v40 = vpop.f32.mrb[9].mxu1  ;;  %s1612_s23 = smov 24  }
 0x461   : > { %v804_v41 = vpop.f32.mrb[10].mxu1 }
 0x462   : > { %v1396_v42 = vpop.f32.mrb[11].mxu1 }
 0x467   : > { %v919_v45 = vpop.f32.mrb[12].mxu1 }
 0x468   : > { %926 = vrot.lane.b32.xlu1 %v919_v45, %s1611_s15  ;;  %v1407_v46 = vpop.f32.mrb[13].mxu1 }
 0x469   : > { %v922_v47 = vpop.f32.mrb[14].mxu1 }
 0x46a   : > { %v1408_v48 = vpop.f32.mrb[15].mxu1 }
 0x46f   : > { %v1037_v49 = vpop.f32.mrb[16].mxu1 }
 0x470   : > { %1044 = vrot.lane.b32.xlu0 %v1037_v49, %s1612_s23  ;;  %v1419_v50 = vpop.f32.mrb[17].mxu1  ;;  %s1331_s23 = sshll.u32 %s1591_s20, 9  ;;  %s1613_s20 = smov [#allocation3]  }
 0x471   : > { %v1040_v51 = vpop.f32.mrb[18].mxu1  ;;  %s1869_s24 = scalar_lea.hbm %s1944_s11, %s1331_s23  ;;  %s1525_s16 = sshll.u32 %s1613_s20, 4  ;;  %s1526_s16 = int_to_ptr.vmem [resolvable:$false] %s1525_s16 }
 0x472   : > { %v1420_v52 = vpop.f32.mrb[19].mxu1  ;;  %s1527_s1 = scalar_lea.vmem %s1526_s16, 1024  ;;  %p1528_p1 = scmp.lt.s32.totalorder %s1871_s28, %s1526_s16 }
 0x473   : > { %p1529_p2 = scmp.lt.s32.totalorder %s1527_s1, %s1521_s0 }
 0x475   : > { %p1530_p3 = por %p1529_p2, %p1528_p1 }
 0x477   : > { %p1531_p5 = pnand %p1530_p3, %p1524_p0 }
 0x4d2   : > { %v809_v53 = vpop.permute.xlu0 %808 }
 0x4d3   : > { %812 = vst.msk [vmem:[#allocation2] sm:$0xff] %vm811_vm4, %v809_v53 }
 0x4da   : > { %v927_v54 = vpop.permute.xlu1 %926 }
 0x4db   : > { %930 = vst.msk [vmem:[#allocation2] sm:$0xff] %vm929_vm5, %v927_v54 }
 0x4e2   : > { %v1045_v1 = vpop.permute.xlu0 %1044 }
 0x4e3   : > { %1048 = vst.msk [vmem:[#allocation2] sm:$0xff] %vm1047_vm6, %v1045_v1 }
 0x4ea   : > { %v1049_v55 = vld [vmem:[#allocation2] sm:$0xff] }
 0x4eb   : > { %v1050_v56 = vpack.c.bf16 %v1049_v55, %v1049_v55 }
 0x4ed   : > { %1426 = vmatmul.mubr.msk.bf16.vlgmr.msra.gmra.mrb[20].mxu0 %vm470_vm1, %v1050_v56 }
 0x5c0   : > { %v1111_v58 = vpop.f32.mrb[20].mxu0 }
 0x5c1   : > { %v1112_v59 = vadd.f32 %v1320_v57, %v1111_v58  ;;  %v1427_v60 = vpop.f32.mrb[21].mxu0 }
 0x5c2   : > { %v1114_v61 = vpop.f32.mrb[22].mxu0 }
 0x5c3   : > { %v1428_v62 = vpop.f32.mrb[23].mxu0  ;;  %v1117_v63 = vadd.f32 %v1112_v59, %v1764_v7 }
 0x5c5   : > { %v1118_v0 = vsel %vm470_vm1, %v1117_v63, 0.0 }
 0x5c6   : > { %1119 = vadd.xlane.f32.xlu1 %v1118_v0 }
 0x653   : > { %v1120_v2 = vpop.xlane.xlu1 %1119 }
 0x654   : > { %v1122_v3 = vmul.f32 0.03125, %v1120_v2 }
 0x656   : > { %v1123_v4 = vsub.f32 %v1117_v63, %v1122_v3 }
 0x658   : > { %v1124_v5 = vmul.f32 %v1123_v4, %v1123_v4 }
 0x65a   : > { %v1125_v6 = vsel %vm470_vm1, %v1124_v5, 0.0 }
 0x65b   : > { %1126 = vadd.xlane.f32.xlu0 %v1125_v6 }
 0x65c   : > { %1534 = shalt.err (!%p1531_p5)
}
 0x65d   : > { %s1535_s13 = scalar_lea.hbm %s1869_s24, 512  ;;  %s1539_s15 = scalar_lea.hbm %s1944_s11, 1024 }
 0x65e   : > { %p1536_p6 = scmp.ne.s32.totalorder %s1869_s24, %s1535_s13  ;;  %p1540_p10 = scmp.lt.u32.totalorder %s1869_s24, %s1944_s11 }
 0x65f   : > { %p1541_p11 = scmp.lt.u32.totalorder %s1539_s15, %s1535_s13  ;;  %p1543_p13 = scmp.lt.u32.totalorder %s1535_s13, %s1869_s24 }
 0x660   : > { %p1537_p7 = pnand %p1536_p6, %p1715_p4 }
 0x661   : > { %p1542_p12 = por %p1541_p11, %p1540_p10 }
 0x662   : > { %p1538_p9 = pneg %p1537_p7 }
 0x663   : > { %p1544_p0 = por %p1543_p13, %p1542_p12 }
 0x665   : > { %p1545_p1 = pnand %p1544_p0, %p1538_p9 }
 0x667   : > { %1548 = shalt.err (!%p1545_p1)
}
 0x668   : > { %s1614_s0 = smov 128   ;;  %s1952_s1 = smov 8   ;;  %v1324_v11 = vld [vmem:[%s1941_s8] ss:$0 sm:$0xff] }
 0x669   : > { %1429 = dma.vmem_to_hbm [thread:$0]  (%p1715_p4), %s1871_s28, 512, %s1869_s24, %s1875_s26, %s1614_s0, %s1614_s0, %s1952_s1  }
 0x66a   : > { %v1325_v13 = vld [vmem:[%s1942_s9] ss:$0 sm:$0xff]  ;;  %s442_s16 = scalar_lea.vmem %s1943_s10, %s1752_s12 }
 0x6e8   : > { %v1127_v7 = vpop.xlane.xlu0 %1126 }
 0x6e9   : > { %v1128_v8 = vmul.f32 0.03125, %v1127_v7 }
 0x6eb   : > { %v1129_v9 = vadd.f32 1e-05, %v1128_v8 }
 0x6ed   : > { %1519 = vrsqrt.f32 %v1129_v9 }
 0x6f7   : > { %v1520_v10 = vpop.eup %1519 }
 0x6f8   : > { %v1131_v12 = vmul.f32 %v1520_v10, %v1123_v4 }
 0x6fa   : > { %v1139_v14 = vmul.f32 %v1324_v11, %v1131_v12 }
 0x6fc   : > { %v1147_v15 = vadd.f32 %v1325_v13, %v1139_v14 }
 0x6fe   : > { %1148 = vst.msk [vmem:[%s442_s16] sm:$0xff] %vm470_vm1, %v1147_v15 }
 0x6ff PF: > { %p1435_p4 = scmp.ge.s32.totalorder %s1599_s22, 2  ;;  %s1199_s28 = sand.u32 1, %s1579_s17  }
 0x700   : > { %s1200_s24 = scalar_lea.sflag [#allocation4], %s1199_s28 }
 0x701   : > { %p1432_p2 = pnand %p1435_p4, %p1722_p8 }
 0x703   : > { %1574 = dma.done.wait (!%p1432_p2), %s1200_s24, 512  }
 0x704   : > { %1576 = vsyncadd (!%p1432_p2), %s1200_s24, 4294966784  ;;  %s25_s22 = sadd.s32 1, %s1599_s22   ;;  %s1953_s17 = smov %s1583_s18 }
 0x705   : > { %p22_p3 = scmp.ge.s32.totalorder %s25_s22, 4   ;;  %s1954_s18 = smov %s1587_s19 }
 0x706   : > { %s1955_s19 = smov %s1728_s30  ;;  %s1956_s20 = smov %s1595_s21 }
 0x707   : > { %s1957_s21 = smov %s1959_s25  ;;  %24 = sbr.rel (!%p22_p3) target bundleno = 7 (0x7), region = 113 }
 0x70e   :  { %1205 = vsyncpa [#allocation4], 1 }
 0x70f   :  { %1207 = vsyncpa [#allocation4 + $0x1], 1 }

// kernel: decoder_layer.4
= control target key start
LH: loop header
LB: loop body
LE: loop exit
PB: predicated region body
PF: predicated region fallthrough
CT: control target
= control target key end

     0   :  { %s1931_s0 = inlined_call_operand.vmem [shape: f32[2,8,32], index: 0, kind: input, shape index: {}]   ;;  %s1932_s1 = inlined_call_operand.vmem [shape: f32[2,16,32], index: 1, kind: input, shape index: {}]   ;;  %s1933_s2 = inlined_call_operand.vmem [shape: bf16[32,32], index: 2, kind: input, shape index: {}]   ;;  %s1934_s3 = inlined_call_operand.vmem [shape: f32[1,32], index: 3, kind: input, shape index: {}]   ;;  %s1935_s4 = inlined_call_operand.vmem [shape: bf16[32,64], index: 4, kind: input, shape index: {}]   ;;  %s1936_s5 = inlined_call_operand.vmem [shape: f32[1,64], index: 5, kind: input, shape index: {}]   ;;  %s1937_s6 = inlined_call_operand.vmem [shape: bf16[32,32], index: 6, kind: input, shape index: {}]   ;;  %s1938_s7 = inlined_call_operand.vmem [shape: f32[1,32], index: 7, kind: input, shape index: {}]   ;;  %s1939_s8 = inlined_call_operand.vmem [shape: f32[1,32], index: 8, kind: input, shape index: {}]   ;;  %s1940_s9 = inlined_call_operand.vmem [shape: f32[1,32], index: 9, kind: input, shape index: {}]   ;;  %s1941_s10 = inlined_call_operand.vmem [shape: f32[2,8,32], index: 10, kind: output, shape index: {0}]   ;;  %s1942_s11 = inlined_call_operand.hbm [shape: f32[2,4,8,16], index: 11, kind: output, shape index: {1}]  }
   0x1   :  { %1946 = sst [smem:[#allocation7_spill]] %s1935_s4 }
   0x2   :  { %17 = vsyncpa [#allocation4], 0 }
   0x3   :  { %19 = vsyncpa [#allocation4 + $0x1], 0  ;;  %s1674_s17 = smov 0   ;;  %s1676_s18 = smov 0  }
   0x4   :  { %s1678_s19 = smov 0   ;;  %s1680_s20 = smov 0  }
   0x5   :  { %s1682_s21 = smov 0   ;;  %s1684_s22 = smov 0  }
   0x6 LB: > { %s1289_s23 = sadd.s32 4294967295, %s1598_s22   ;;  %s1290_s24 = sadd.s32 4294967294, %s1598_s22   ;;  %s1598_s22 = sphi %s1684_s22, %s25_s22   ;;  %s1594_s21 = sphi %s1682_s21, %s1958_s21   ;;  %s1590_s20 = sphi %s1680_s20, %s1957_s20   ;;  %s1586_s19 = sphi %s1678_s19, %s1956_s19   ;;  %s1582_s18 = sphi %s1676_s18, %s1955_s18   ;;  %s1578_s17 = sphi %s1674_s17, %s1954_s17  }
   0x7   : > { %s37_s25 = sadd.s32 1, %s1594_s21  ;;  %s296_s26 = sadd.s32 1, %s1586_s19 }
   0x8   : > { %p39_p0 = scmp.ge.s32.totalorder %s37_s25, 2  ;;  %p306_p1 = scmp.ne.s32.totalorder %s1586_s19, %s1582_s18 }
   0x9   : > { %p307_p2 = scmp.eq.s32.totalorder %s1289_s23, 1  ;;  %p312_p3 = scmp.ne.s32.totalorder %s1582_s18, %s1578_s17 }
   0xa   : > { %s1960_s25 = smov (%p39_p0, %s37_s25), 0  ;;  %p313_p5 = scmp.eq.s32.totalorder %s1290_s24, 1 }
   0xb   : > { %1947 = sst [smem:[#allocation6_spill]] %s1960_s25  ;;  %p1714_p4 = por %p307_p2, %p306_p1 }
   0xc   : > { %s291_s28 = ssub.s32 %s1594_s21, %s1960_s25  ;;  %p1293_p6 = scmp.ge.s32.totalorder %s1598_s22, 1 }
   0xd   : > { %p294_p7 = scmp.eq.s32.totalorder %s291_s28, 0  ;;  %p1721_p8 = por %p313_p5, %p312_p3 }
   0xe   : > { %p373_p9 = scmp.lt.s32.totalorder %s1598_s22, 3 }
   0xf   : > { %s1727_s30 = scalar_select %p294_p7, %s1586_s19, %s296_s26  }
  0x10   : > { %p374_p10 = pnand %p1293_p6, %p373_p9 }
  0x11   : > { %s1950_s4 = sld [smem:[#allocation7_spill]] (!%p374_p10)  ;;  %v1600_v1 = vmov (!%p374_p10), 0.0   ;;  %v1498_v3 = vld [vmem:[%s1933_s2] sm:$0xff] (!%p374_p10)   ;;  %vm1601_vm0 = vmmov (!%p374_p10), 0   ;;  %p427_p11 = scmp.lt.s32.totalorder (!%p374_p10), %s1590_s20, 1  ;;  %v1499_v4 = vld [vmem:[%s1933_s2 + $0x8] sm:$0xff] (!%p374_p10)  }
  0x12   : > { %377 = sbr.rel (%p374_p10) target bundleno = 1792 (0x700), region = 60  ;;  %1364 = vmatprep.subr.bf16.mxu1 (!%p374_p10), %v1600_v1  ;;  %1356 = vmatprep.subr.bf16.mxu0 (!%p374_p10), %v1600_v1  ;;  %vm474_vm1 = vcmask (!%p374_p10), 261120   ;;  %v1303_v10 = vld [vmem:[%s1936_s5] ss:$0 sm:$0xff] (!%p374_p10)  ;;  %vm588_vm2 = vcmask (!%p374_p10), 64512   ;;  %s1603_s14 = smov (!%p374_p10), 120  }
  0x13   : > { %1368 = vmatprep.mubr.msk.bf16.mxu1 (!%p374_p10), %vm1601_vm0, %v1600_v1  ;;  %1360 = vmatprep.mubr.msk.bf16.mxu0 (!%p374_p10), %vm1601_vm0, %v1600_v1  ;;  %v1299_v12 = vld [vmem:[%s1934_s3] ss:$0 sm:$0xff] (!%p374_p10)  ;;  %s1604_s15 = smov (!%p374_p10), 104   ;;  %vm635_vm3 = vcmask (!%p374_p10), 130048   ;;  %s1606_s23 = smov (!%p374_p10), 80   ;;  %vm812_vm4 = vcmask (!%p374_p10), 130112  }
  0x14   : > { %1357 = vmatpush3.bf16.msra.mxu0 (!%p374_p10), %v1498_v3  ;;  %s424_s26 = sand.u32 (!%p374_p10), 1, %s1582_s18   ;;  %s1608_s28 = smov (!%p374_p10), 88   ;;  %vm928_vm5 = vcmask (!%p374_p10), 195712   ;;  %vm1044_vm6 = vcmask (!%p374_p10), 261312  }
  0x15   : > { %1358 = vmatprep.subr.bf16.mxu0 (!%p374_p10), %v1600_v1 }
  0x17   : > { %v1496_v0 = vld [vmem:[%s1950_s4] sm:$0xff] (!%p374_p10)   ;;  %v1497_v2 = vld [vmem:[%s1950_s4 + $0x8] sm:$0xff] (!%p374_p10)   ;;  %s1607_s4 = smov (!%p374_p10), 72  }
  0x18   : > { %1365 = vmatpush3.bf16.msra.mxu1 (!%p374_p10), %v1496_v0  ;;  %1359 = vmatpush3.bf16.msra.mxu0 (!%p374_p10), %v1499_v4 }
  0x19   : > { %1366 = vmatprep.subr.bf16.mxu1 %v1600_v1  ;;  %s1747_s24 = scalar_select %p427_p11, %s1590_s20, 1  ;;  %1372 = vmatprep.subr.bf16.mxu0 %v1600_v1 }
  0x1b   : > { %s1329_s12 = sshll.u32 %s1747_s24, 4  ;;  %s1944_s13 = sshll.u32 %s1747_s24, 3 }
  0x1c   : > { %1367 = vmatpush3.bf16.msra.mxu1 %v1497_v2  ;;  %s438_s16 = scalar_lea.vmem %s1932_s1, %s1329_s12  ;;  %s433_s25 = scalar_lea.vmem %s1931_s0, %s1944_s13 }
  0x1d   : > { %1378 = vmatprep.subr.bf16.mxu1 %v1600_v1  ;;  %v448_v5 = vld [vmem:[%s438_s16] sm:$0xff]  ;;  %v449_v6 = vld [vmem:[%s438_s16 + $0x8] sm:$0xff]  ;;  %s1602_s12 = smov 112   ;;  %s1605_s16 = smov 96  }
  0x1e   : > { %v1764_v7 = vld [vmem:[%s433_s25] sm:$0xff]  ;;  %v518_v8 = vpack.c.bf16 %v449_v6, %v448_v5  ;;  %s1294_s25 = sshll.u32 %s424_s26, 5 }
  0x1f   : > { %v450_v9 = vpack.c.bf16 %v1764_v7, %v1764_v7 }
  0x20   : > { %1369 = vmatmul.mubr.msk.bf16.vlgmr.msra.gmra.mrb[0].mxu1 %vm474_vm1, %v518_v8 }
  0x21   : > { %1361 = vmatmul.mubr.msk.bf16.vlgmr.msra.gmra.mrb[0].mxu0 %vm474_vm1, %v450_v9  ;;  %1380 = vmatprep.mubr.msk.bf16.mxu1 %vm1601_vm0, %v1600_v1 }
  0x22   : > { %1374 = vmatprep.mubr.msk.bf16.mxu0 %vm1601_vm0, %v1600_v1 }
  0xf3   : > { %v579_v11 = vpop.f32.mrb[0].mxu1 }
  0xf4   : > { %v512_v13 = vpop.f32.mrb[0].mxu0  ;;  %v1370_v14 = vpop.f32.mrb[1].mxu1  ;;  %v580_v18 = vadd.f32 %v1303_v10, %v579_v11 }
  0xf5   : > { %v1362_v15 = vpop.f32.mrb[1].mxu0  ;;  %v582_v16 = vpop.f32.mrb[2].mxu1  ;;  %v513_v21 = vadd.f32 %v1299_v12, %v512_v13 }
  0xf6   : > { %v515_v17 = vpop.f32.mrb[2].mxu0  ;;  %v583_v19 = vadd.f32 %v1303_v10, %v582_v16  ;;  %v1371_v20 = vpop.f32.mrb[3].mxu1 }
  0xf7   : > { %v1363_v22 = vpop.f32.mrb[3].mxu0  ;;  %v586_v24 = vpack.c.bf16 %v513_v21, %v513_v21 }
  0xf8   : > { %v1781_v23 = vpack.c.bf16 %v583_v19, %v580_v18 }
  0xfa   : > { %816 = vrot.lane.b32.xlu1 %v1781_v23, %s1602_s12  ;;  %700 = vrot.lane.b32.xlu0 %v1781_v23, %s1603_s14  ;;  %v593_v25 = vsel %vm588_vm2, %v1781_v23, 0 }
  0xfb   : > { %1373 = vmatpush3.bf16.xpose.msra.mxu0 %v593_v25 }
  0xfc   : > { %1384 = vmatprep.subr.bf16.mxu0 %v1600_v1 }
  0xfe   : > { %814 = vrot.lane.b32.xlu1 %v586_v24, %s1602_s12  ;;  %698 = vrot.lane.b32.xlu0 %v586_v24, %s1603_s14  ;;  %s1823_s12 = scalar_lea.vmem [#allocation3], %s1294_s25  ;;  %s1945_s14 = smov 8  }
  0xff   : > { %s1610_s25 = smov 16  }
 0x102   : > { %930 = vrot.lane.b32.xlu1 %v586_v24, %s1604_s15  ;;  %932 = vrot.lane.b32.xlu0 %v1781_v23, %s1604_s15 }
 0x103   : > { %1375 = vmatmul.mubr.msk.bf16.vlgmr.msra.gmra.mrb[4].mxu0 %vm588_vm2, %v586_v24 }
 0x104   : > { %1386 = vmatprep.mubr.msk.bf16.mxu0 %vm1601_vm0, %v1600_v1 }
 0x16c   : > { %v701_v26 = vpop.permute.xlu0 %700  ;;  %v817_v28 = vpop.permute.xlu1 %816 }
 0x16d   : > { %v706_v27 = vsel %vm588_vm2, %v701_v26, 0  ;;  %v822_v30 = vsel %vm588_vm2, %v817_v28, 0 }
 0x16e   : > { %1385 = vmatpush3.bf16.xpose.msra.mxu0 %v706_v27 }
 0x16f   : > { %1396 = vmatprep.subr.bf16.mxu0 %v1600_v1 }
 0x170   : > { %v699_v29 = vpop.permute.xlu0 %698  ;;  %v815_v32 = vpop.permute.xlu1 %814 }
 0x174   : > { %v933_v31 = vpop.permute.xlu0 %932  ;;  %v931_v34 = vpop.permute.xlu1 %930 }
 0x175   : > { %1387 = vmatmul.mubr.msk.bf16.vlgmr.msra.gmra.mrb[8].mxu0 %vm588_vm2, %v699_v29  ;;  %v938_v33 = vsel %vm588_vm2, %v933_v31, 0 }
 0x176   : > { %1397 = vmatpush3.bf16.xpose.msra.mxu0 %v822_v30  ;;  %1398 = vmatprep.mubr.msk.bf16.mxu0 %vm1601_vm0, %v1600_v1 }
 0x177   : > { %1408 = vmatprep.subr.bf16.mxu0 %v1600_v1 }
 0x17d   : > { %1399 = vmatmul.mubr.msk.bf16.vlgmr.msra.gmra.mrb[12].mxu0 %vm588_vm2, %v815_v32 }
 0x17e   : > { %1409 = vmatpush3.bf16.xpose.msra.mxu0 %v938_v33  ;;  %1410 = vmatprep.mubr.msk.bf16.mxu0 %vm1601_vm0, %v1600_v1 }
 0x17f   : > { %1420 = vmatprep.subr.bf16.mxu0 %v1600_v1 }
 0x185   : > { %1411 = vmatmul.mubr.msk.bf16.vlgmr.msra.gmra.mrb[16].mxu0 %vm588_vm2, %v931_v34 }
 0x186   : > { %1424 = vmatprep.mubr.msk.bf16.mxu0 %vm1601_vm0, %v1600_v1 }
 0x1d6   : > { %v629_v35 = vpop.f32.mrb[4].mxu0 }
 0x1d7   : > { %v1376_v36 = vpop.f32.mrb[5].mxu0  ;;  %v636_v37 = vsel %vm635_vm3, %v629_v35, -inf }
 0x1d8   : > { %637 = vmax.xlane.f32.xlu0 %v636_v37  ;;  %v632_v38 = vpop.f32.mrb[6].mxu0 }
 0x1d9   : > { %v1377_v39 = vpop.f32.mrb[7].mxu0 }
 0x248   : > { %v742_v40 = vpop.f32.mrb[8].mxu0 }
 0x249   : > { %v1388_v41 = vpop.f32.mrb[9].mxu0  ;;  %v748_v42 = vsel %vm635_vm3, %v742_v40, -inf }
 0x24a   : > { %749 = vmax.xlane.f32.xlu1 %v748_v42  ;;  %v745_v43 = vpop.f32.mrb[10].mxu0  ;;  %v1500_v41 = vld [vmem:[%s1937_s6] sm:$0xff]   ;;  %v1501_v42 = vld [vmem:[%s1937_s6 + $0x8] sm:$0xff]  }
 0x24b   : > { %v1389_v44 = vpop.f32.mrb[11].mxu0  ;;  %1421 = vmatpush3.bf16.msra.mxu0 %v1500_v41 }
 0x24c   : > { %1422 = vmatprep.subr.bf16.mxu0 %v1600_v1 }
 0x24f   : > { %1423 = vmatpush3.bf16.msra.mxu0 %v1501_v42 }
 0x250   : > { %v858_v45 = vpop.f32.mrb[12].mxu0 }
 0x251   : > { %v1400_v46 = vpop.f32.mrb[13].mxu0  ;;  %v864_v47 = vsel %vm635_vm3, %v858_v45, -inf }
 0x252   : > { %865 = vmax.xlane.f32.xlu0 %v864_v47  ;;  %v861_v48 = vpop.f32.mrb[14].mxu0 }
 0x253   : > { %v1401_v49 = vpop.f32.mrb[15].mxu0 }
 0x258   : > { %v974_v50 = vpop.f32.mrb[16].mxu0 }
 0x259   : > { %v1412_v51 = vpop.f32.mrb[17].mxu0  ;;  %v980_v52 = vsel %vm635_vm3, %v974_v50, -inf }
 0x25a   : > { %981 = vmax.xlane.f32.xlu0 %v980_v52  ;;  %v977_v53 = vpop.f32.mrb[18].mxu0 }
 0x25b   : > { %v1413_v54 = vpop.f32.mrb[19].mxu0 }
 0x265   : > { %v638_v55 = vpop.xlane.xlu0 %637 }
 0x266   : > { %v639_v56 = vsub.f32 %v629_v35, %v638_v55  ;;  %v1318_v55 = vld [vmem:[%s1938_s7] ss:$0 sm:$0xff] }
 0x268   : > { %v640_v57 = vmul.f32 1.442695, %v639_v56 }
 0x26a   : > { %1502 = vpow2.f32 %v640_v57 }
 0x274   : > { %v1503_v58 = vpop.eup %1502 }
 0x275   : > { %v642_v59 = vsel %vm635_vm3, %v1503_v58, 0.0 }
 0x276   : > { %643 = vadd.xlane.f32.xlu1 %v642_v59 }
 0x287   : > { %650 = vrot.lane.b32.xlu1 %v1781_v23, %s1605_s16  ;;  %s1872_s16 = scalar_lea.sflag [#allocation4], %s424_s26 }
 0x2d7   : > { %v750_v60 = vpop.xlane.xlu1 %749 }
 0x2d8   : > { %v751_v61 = vsub.f32 %v742_v40, %v750_v60 }
 0x2da   : > { %v752_v62 = vmul.f32 1.442695, %v751_v61 }
 0x2dc   : > { %1504 = vpow2.f32 %v752_v62 }
 0x2df   : > { %v866_v63 = vpop.xlane.xlu0 %865 }
 0x2e0   : > { %v867_v0 = vsub.f32 %v858_v45, %v866_v63 }
 0x2e2   : > { %v868_v2 = vmul.f32 1.442695, %v867_v0 }
 0x2e4   : > { %1506 = vpow2.f32 %v868_v2 }
 0x2e6   : > { %v1505_v3 = vpop.eup %1504 }
 0x2e7   : > { %v982_v4 = vpop.xlane.xlu0 %981  ;;  %v754_v5 = vsel %vm635_vm3, %v1505_v3, 0.0 }
 0x2e8   : > { %v983_v6 = vsub.f32 %v974_v50, %v982_v4  ;;  %755 = vadd.xlane.f32.xlu0 %v754_v5 }
 0x2ea   : > { %v984_v8 = vmul.f32 1.442695, %v983_v6 }
 0x2ec   : > { %1508 = vpow2.f32 %v984_v8 }
 0x2ee   : > { %v1507_v9 = vpop.eup %1506 }
 0x2ef   : > { %v870_v10 = vsel %vm635_vm3, %v1507_v9, 0.0 }
 0x2f0   : > { %871 = vadd.xlane.f32.xlu1 %v870_v10 }
 0x2f6   : > { %v1509_v11 = vpop.eup %1508 }
 0x2f7   : > { %v986_v12 = vsel %vm635_vm3, %v1509_v11, 0.0 }
 0x2f8   : > { %987 = vadd.xlane.f32.xlu0 %v986_v12 }
 0x301   : > { %878 = vrot.lane.b32.xlu1 %v1781_v23, %s1606_s23  ;;  %s1330_s23 = sshll.u32 %s1590_s20, 9  ;;  %s1612_s20 = smov [#allocation3]  }
 0x302   : > { %s1866_s15 = scalar_lea.hbm %s1942_s11, %s1330_s23 }
 0x303   : > { %v644_v13 = vpop.xlane.xlu1 %643 }
 0x304   : > { %1510 = vrcp.f32 %v644_v13 }
 0x305   : > { %994 = vrot.lane.b32.xlu1 %v1781_v23, %s1607_s4  ;;  %s1171_s4 = sshll.u32 %s1823_s12, 4  ;;  %s1868_s4 = int_to_ptr.vmem [resolvable:$true] %s1171_s4 }
 0x306   : > { %s1520_s13 = scalar_lea.vmem %s1868_s4, 512 }
 0x307   : > { %v651_v14 = vpop.permute.xlu1 %650  ;;  %p1521_p12 = scmp.ne.s32.totalorder %s1868_s4, %s1520_s13 }
 0x308   : > { %1379 = vmatpush3.bf16.msra.mxu1 %v651_v14 }
 0x309   : > { %1390 = vmatprep.subr.bf16.mxu1 %v1600_v1  ;;  %p1522_p13 = pnand %p1521_p12, %p1714_p4 }
 0x30b   : > { %p1523_p0 = pneg %p1522_p13 }
 0x30e   : > { %v1511_v15 = vpop.eup %1510  ;;  %762 = vrot.lane.b32.xlu0 %v1781_v23, %s1608_s28  ;;  %s1611_s28 = smov 24  }
 0x30f   : > { %v646_v16 = vmul.f32 %v1511_v15, %v1503_v58 }
 0x311   : > { %647 = vst.msk [vmem:[%s1823_s12] sm:$0xff] %vm635_vm3, %v646_v16  ;;  %v648_v17 = vpack.c.bf16 %v646_v16, %v646_v16 }
 0x313   : > { %1381 = vmatmul.mubr.msk.bf16.vlgmr.msra.gmra.mrb[4].mxu1 %vm635_vm3, %v648_v17 }
 0x314   : > { %1392 = vmatprep.mubr.msk.bf16.mxu1 %vm1601_vm0, %v1600_v1 }
 0x375   : > { %v756_v18 = vpop.xlane.xlu0 %755 }
 0x376   : > { %1512 = vrcp.f32 %v756_v18 }
 0x37d   : > { %v872_v19 = vpop.xlane.xlu1 %871 }
 0x37e   : > { %1514 = vrcp.f32 %v872_v19 }
 0x380   : > { %v1513_v20 = vpop.eup %1512 }
 0x381   : > { %v758_v21 = vmul.f32 %v1513_v20, %v1505_v3  ;;  %v879_v27 = vpop.permute.xlu1 %878 }
 0x383   : > { %1310 = vst.msk [vmem:[%s1823_s12 + $0x8] sm:$0xff] %vm635_vm3, %v758_v21  ;;  %v761_v26 = vpack.c.bf16 %v758_v21, %v758_v21 }
 0x385   : > { %v988_v22 = vpop.xlane.xlu0 %987  ;;  %v995_v31 = vpop.permute.xlu1 %994 }
 0x386   : > { %1516 = vrcp.f32 %v988_v22 }
 0x388   : > { %v1515_v23 = vpop.eup %1514 }
 0x389   : > { %v874_v24 = vmul.f32 %v1515_v23, %v1507_v9  ;;  %v763_v25 = vpop.permute.xlu0 %762 }
 0x38a   : > { %1391 = vmatpush3.bf16.msra.mxu1 %v763_v25 }
 0x38b   : > { %1313 = vst.msk [vmem:[%s1823_s12 + $0x10] sm:$0xff] %vm635_vm3, %v874_v24  ;;  %1402 = vmatprep.subr.bf16.mxu1 %v1600_v1  ;;  %v877_v30 = vpack.c.bf16 %v874_v24, %v874_v24 }
 0x38d   : > { %1393 = vmatmul.mubr.msk.bf16.vlgmr.msra.gmra.mrb[8].mxu1 %vm635_vm3, %v761_v26 }
 0x38e   : > { %1403 = vmatpush3.bf16.msra.mxu1 %v879_v27  ;;  %1404 = vmatprep.mubr.msk.bf16.mxu1 %vm1601_vm0, %v1600_v1 }
 0x38f   : > { %1414 = vmatprep.subr.bf16.mxu1 %v1600_v1 }
 0x390   : > { %v1517_v28 = vpop.eup %1516 }
 0x391   : > { %v990_v29 = vmul.f32 %v1517_v28, %v1509_v11 }
 0x393   : > { %1316 = vst.msk [vmem:[%s1823_s12 + $0x18] sm:$0xff] %vm635_vm3, %v990_v29  ;;  %v993_v32 = vpack.c.bf16 %v990_v29, %v990_v29  ;;  %s1524_s12 = sshll.u32 %s1612_s20, 4  ;;  %s1525_s12 = int_to_ptr.vmem [resolvable:$false] %s1524_s12 }
 0x394   : > { %p1527_p1 = scmp.lt.s32.totalorder %s1868_s4, %s1525_s12 }
 0x395   : > { %1405 = vmatmul.mubr.msk.bf16.vlgmr.msra.gmra.mrb[12].mxu1 %vm635_vm3, %v877_v30 }
 0x396   : > { %1415 = vmatpush3.bf16.msra.mxu1 %v995_v31  ;;  %1416 = vmatprep.mubr.msk.bf16.mxu1 %vm1601_vm0, %v1600_v1 }
 0x39d   : > { %1417 = vmatmul.mubr.msk.bf16.vlgmr.msra.gmra.mrb[16].mxu1 %vm635_vm3, %v993_v32 }
 0x3e6   : > { %v690_v33 = vpop.f32.mrb[4].mxu1 }
 0x3e7   : > { %696 = vst.msk [vmem:[#allocation2] sm:$0xff] %vm588_vm2, %v690_v33  ;;  %v1382_v34 = vpop.f32.mrb[5].mxu1 }
 0x3e8   : > { %v693_v35 = vpop.f32.mrb[6].mxu1 }
 0x3e9   : > { %v1383_v36 = vpop.f32.mrb[7].mxu1 }
 0x460   : > { %v802_v37 = vpop.f32.mrb[8].mxu1 }
 0x461   : > { %809 = vrot.lane.b32.xlu0 %v802_v37, %s1945_s14  ;;  %v1394_v38 = vpop.f32.mrb[9].mxu1  ;;  %s1526_s14 = scalar_lea.vmem %s1525_s12, 1024 }
 0x462   : > { %v805_v39 = vpop.f32.mrb[10].mxu1  ;;  %p1528_p2 = scmp.lt.s32.totalorder %s1526_s14, %s1520_s13 }
 0x463   : > { %v1395_v40 = vpop.f32.mrb[11].mxu1 }
 0x464   : > { %p1529_p3 = por %p1528_p2, %p1527_p1 }
 0x466   : > { %p1530_p5 = pnand %p1529_p3, %p1523_p0 }
 0x468   : > { %v918_v43 = vpop.f32.mrb[12].mxu1 }
 0x469   : > { %925 = vrot.lane.b32.xlu1 %v918_v43, %s1610_s25  ;;  %v1406_v44 = vpop.f32.mrb[13].mxu1 }
 0x46a   : > { %v921_v45 = vpop.f32.mrb[14].mxu1 }
 0x46b   : > { %v1407_v46 = vpop.f32.mrb[15].mxu1 }
 0x470   : > { %v1034_v47 = vpop.f32.mrb[16].mxu1 }
 0x471   : > { %1041 = vrot.lane.b32.xlu0 %v1034_v47, %s1611_s28  ;;  %v1418_v48 = vpop.f32.mrb[17].mxu1 }
 0x472   : > { %v1037_v49 = vpop.f32.mrb[18].mxu1 }
 0x473   : > { %v1419_v50 = vpop.f32.mrb[19].mxu1 }
 0x4d3   : > { %v810_v51 = vpop.permute.xlu0 %809 }
 0x4d4   : > { %813 = vst.msk [vmem:[#allocation2] sm:$0xff] %vm812_vm4, %v810_v51 }
 0x4db   : > { %v926_v52 = vpop.permute.xlu1 %925 }
 0x4dc   : > { %929 = vst.msk [vmem:[#allocation2] sm:$0xff] %vm928_vm5, %v926_v52 }
 0x4e3   : > { %v1042_v1 = vpop.permute.xlu0 %1041 }
 0x4e4   : > { %1045 = vst.msk [vmem:[#allocation2] sm:$0xff] %vm1044_vm6, %v1042_v1 }
 0x4eb   : > { %v1046_v53 = vld [vmem:[#allocation2] sm:$0xff] }
 0x4ec   : > { %v1047_v54 = vpack.c.bf16 %v1046_v53, %v1046_v53 }
 0x4ee   : > { %1425 = vmatmul.mubr.msk.bf16.vlgmr.msra.gmra.mrb[20].mxu0 %vm474_vm1, %v1047_v54 }
 0x5c1   : > { %v1108_v56 = vpop.f32.mrb[20].mxu0 }
 0x5c2   : > { %v1109_v57 = vadd.f32 %v1318_v55, %v1108_v56  ;;  %v1426_v58 = vpop.f32.mrb[21].mxu0 }
 0x5c3   : > { %v1111_v59 = vpop.f32.mrb[22].mxu0 }
 0x5c4   : > { %v1427_v60 = vpop.f32.mrb[23].mxu0  ;;  %v1114_v61 = vadd.f32 %v1109_v57, %v1764_v7 }
 0x5c6   : > { %v1115_v62 = vsel %vm474_vm1, %v1114_v61, 0.0 }
 0x5c7   : > { %1116 = vadd.xlane.f32.xlu1 %v1115_v62 }
 0x654   : > { %v1117_v63 = vpop.xlane.xlu1 %1116 }
 0x655   : > { %v1119_v0 = vmul.f32 0.03125, %v1117_v63 }
 0x657   : > { %v1120_v2 = vsub.f32 %v1114_v61, %v1119_v0 }
 0x659   : > { %v1121_v3 = vmul.f32 %v1120_v2, %v1120_v2 }
 0x65b   : > { %v1122_v4 = vsel %vm474_vm1, %v1121_v3, 0.0 }
 0x65c   : > { %1123 = vadd.xlane.f32.xlu0 %v1122_v4 }
 0x65d   : > { %1533 = shalt.err (!%p1530_p5)
}
 0x65e   : > { %s1534_s26 = scalar_lea.hbm %s1866_s15, 512  ;;  %s1538_s28 = scalar_lea.hbm %s1942_s11, 1024 }
 0x65f   : > { %p1535_p6 = scmp.ne.s32.totalorder %s1866_s15, %s1534_s26  ;;  %p1539_p10 = scmp.lt.u32.totalorder %s1866_s15, %s1942_s11 }
 0x660   : > { %p1540_p11 = scmp.lt.u32.totalorder %s1538_s28, %s1534_s26  ;;  %p1542_p13 = scmp.lt.u32.totalorder %s1534_s26, %s1866_s15 }
 0x661   : > { %p1536_p7 = pnand %p1535_p6, %p1714_p4 }
 0x662   : > { %p1541_p12 = por %p1540_p11, %p1539_p10 }
 0x663   : > { %p1537_p9 = pneg %p1536_p7 }
 0x664   : > { %p1543_p0 = por %p1542_p13, %p1541_p12 }
 0x666   : > { %p1544_p1 = pnand %p1543_p0, %p1537_p9 }
 0x668   : > { %1547 = shalt.err (!%p1544_p1)
}
 0x669   : > { %s1613_s13 = smov 128   ;;  %s1951_s14 = smov 8   ;;  %v1322_v9 = vld [vmem:[%s1939_s8] ss:$0 sm:$0xff] }
 0x66a   : > { %1428 = dma.vmem_to_hbm [thread:$0]  (%p1714_p4), %s1868_s4, 512, %s1866_s15, %s1872_s16, %s1613_s13, %s1613_s13, %s1951_s14  }
 0x66b   : > { %v1323_v11 = vld [vmem:[%s1940_s9] ss:$0 sm:$0xff]  ;;  %s1952_s27 = sshll.u32 %s1747_s24, 3 }
 0x66c   : > { %s445_s4 = scalar_lea.vmem %s1941_s10, %s1952_s27 }
 0x6e9   : > { %v1124_v7 = vpop.xlane.xlu0 %1123 }
 0x6ea   : > { %v1125_v5 = vmul.f32 0.03125, %v1124_v7 }
 0x6ec   : > { %v1126_v6 = vadd.f32 1e-05, %v1125_v5 }
 0x6ee   : > { %1518 = vrsqrt.f32 %v1126_v6 }
 0x6f8   : > { %v1519_v8 = vpop.eup %1518 }
 0x6f9   : > { %v1128_v10 = vmul.f32 %v1519_v8, %v1120_v2 }
 0x6fb   : > { %v1136_v12 = vmul.f32 %v1322_v9, %v1128_v10 }
 0x6fd   : > { %v1144_v13 = vadd.f32 %v1323_v11, %v1136_v12 }
 0x6ff   : > { %1145 = vst.msk [vmem:[%s445_s4] sm:$0xff] %vm474_vm1, %v1144_v13 }
 0x700 PF: > { %p1434_p4 = scmp.ge.s32.totalorder %s1598_s22, 2  ;;  %s1196_s15 = sand.u32 1, %s1578_s17  }
 0x701   : > { %s1197_s16 = scalar_lea.sflag [#allocation4], %s1196_s15 }
 0x702   : > { %p1431_p2 = pnand %p1434_p4, %p1721_p8 }
 0x704   : > { %1573 = dma.done.wait (!%p1431_p2), %s1197_s16, 512  }
 0x705   : > { %1575 = vsyncadd (!%p1431_p2), %s1197_s16, 4294966784  ;;  %s25_s22 = sadd.s32 1, %s1598_s22   ;;  %s1953_s24 = sld [smem:[#allocation6_spill]] }
 0x706   : > { %p22_p3 = scmp.ge.s32.totalorder %s25_s22, 4   ;;  %s1954_s17 = smov %s1582_s18 }
 0x707   : > { %s1955_s18 = smov %s1586_s19  ;;  %s1956_s19 = smov %s1727_s30 }
 0x708   : > { %s1957_s20 = smov %s1594_s21  ;;  %24 = sbr.rel (!%p22_p3) target bundleno = 6 (0x6), region = 113 }
 0x70b   : > { %s1958_s21 = smov %s1953_s24 }
 0x70f   :  { %1202 = vsyncpa [#allocation4], 1 }
 0x710   :  { %1204 = vsyncpa [#allocation4 + $0x1], 1 }

</bundles_post_ra>
